<compile_context>
chip_gen: v7x
topology: tpu7x:2x2x1
jax: 0.10.0
libtpu: 0.0.40
codegen_flags: <defaults>
</compile_context>

<pallas_src>
import functools

import jax
import jax.numpy as jnp
from jax.experimental import pallas as pl
from jax.experimental.pallas import tpu as pltpu

D_MODEL = 32     # dim_in (module default 300; small synthetic config)
N_HEADS = 2
N_LAYERS = 2
DIM_FF = 64      # TODO(synk): PyTorch default dim_feedforward=2048; scaled down.
EPS = 1e-5       # nn.LayerNorm default eps

D_PAD = 128      # lane-dense padded model dim (prod: 300 -> 384)
FF_PAD = 128     # padded feed-forward dim (prod: 2048 already 128-aligned)


# ---------------------------------------------------------------------------
# fused Pallas kernel: full n_layers encoder stack, one sequence per grid step
# ---------------------------------------------------------------------------
def _encoder_stack_kernel(n_heads, n_layers, d_real,
                          x_ref, wmat_ref, wo_ref, vec_ref, out_ref):
    # x_ref   : (1, S, DP)  f32, zero-padded beyond d_real lanes
    # wmat_ref: (L, DP, (3*n_heads+2)*DP) bf16  [q0..qH,k0..kH,v0..vH,ff1,ff2]
    # wo_ref  : (L, n_heads*DP, DP)        bf16  [per-head padded W_o blocks]
    # vec_ref : (L, 16, DP)                f32   [biases / LN gains, row-packed]
    S, DP = x_ref.shape[1], x_ref.shape[2]
    x = x_ref[0]                                        # (S, DP) f32

    lane = jax.lax.broadcasted_iota(jnp.int32, (1, DP), 1)
    d_mask = (lane < d_real).astype(jnp.float32)        # hoisted once
    inv_d = 1.0 / d_real

    def layer_norm(y, g, b):
        # padded lanes of y are zero, so the lane-sum equals the sum over d_real
        mu = jnp.sum(y, axis=-1, keepdims=True) * inv_d
        yc = (y - mu) * d_mask
        var = jnp.sum(yc * yc, axis=-1, keepdims=True) * inv_d
        # g, b are zero beyond d_real -> padded lanes of the output stay zero
        return yc * jax.lax.rsqrt(var + EPS) * g + b

    for l in range(n_layers):                           # static, VMEM-resident stack
        wmat = wmat_ref[l]                              # (DP, (3H+2)*DP) bf16
        wo = wo_ref[l]                                  # (H*DP, DP)      bf16
        vec = vec_ref[l]                                # (16, DP)        f32

        # ---- fused QKV projection: bf16 operands, f32 accumulate --------------
        xb = x.astype(jnp.bfloat16)
        qkv = jnp.dot(xb, wmat[:, :3 * n_heads * DP],
                      preferred_element_type=jnp.float32)     # (S, 3H*DP)

        # ---- attention: per-head 128-aligned blocks, no lane concat -----------
        attn = jnp.zeros((S, DP), jnp.float32)
        for h in range(n_heads):                        # statically unrolled (H=2)
            q = qkv[:, h * DP:(h + 1) * DP] + vec[h:h + 1]
            k = (qkv[:, (n_heads + h) * DP:(n_heads + h + 1) * DP]
                 + vec[n_heads + h:n_heads + h + 1])
            v = (qkv[:, (2 * n_heads + h) * DP:(2 * n_heads + h + 1) * DP]
                 + vec[2 * n_heads + h:2 * n_heads + h + 1])
            # scale already folded into Wq / bq at pack time
            s = jnp.einsum("qd,kd->qk", q.astype(jnp.bfloat16),
                           k.astype(jnp.bfloat16),
                           preferred_element_type=jnp.float32)          # (S, S)
            s = s - jnp.max(s, axis=-1, keepdims=True)
            p = jnp.exp(s)
            p = p / jnp.sum(p, axis=-1, keepdims=True)  # exact divide (parity)
            o = jnp.dot(p.astype(jnp.bfloat16), v.astype(jnp.bfloat16),
                        preferred_element_type=jnp.float32)             # (S, DP)
            # accumulate heads straight through per-head W_o blocks
            attn = attn + jnp.dot(o.astype(jnp.bfloat16),
                                  wo[h * DP:(h + 1) * DP, :],
                                  preferred_element_type=jnp.float32)

        r = 3 * n_heads                                  # vec row of b_o
        attn = attn + vec[r:r + 1]
        x = layer_norm(x + attn, vec[r + 1:r + 2], vec[r + 2:r + 3])   # post-norm

        # ---- feed-forward (ReLU), bf16 matmuls / f32 elementwise --------------
        xb = x.astype(jnp.bfloat16)
        hid = jnp.dot(xb, wmat[:, r * DP:(r + 1) * DP],
                      preferred_element_type=jnp.float32) + vec[r + 3:r + 4]
        hid = jnp.maximum(hid, 0.0)
        ff = jnp.dot(hid.astype(jnp.bfloat16), wmat[:, (r + 1) * DP:(r + 2) * DP],
                     preferred_element_type=jnp.float32) + vec[r + 4:r + 5]
        x = layer_norm(x + ff, vec[r + 5:r + 6], vec[r + 6:r + 7])

    out_ref[0] = x                                       # lane-dense (S, 128) store


def transformer_encoder_padded(wmat, wo, vecs, x_pad, n_heads=N_HEADS):
    """Padded, batch-first (B, S, D_PAD) fused encoder stack as one pallas_call."""
    B, S, DP = x_pad.shape
    n_layers = wmat.shape[0]
    kernel = functools.partial(_encoder_stack_kernel, n_heads, n_layers, D_MODEL)
    return pl.pallas_call(
        kernel,
        out_shape=jax.ShapeDtypeStruct((B, S, DP), jnp.float32),
        grid_spec=pltpu.PrefetchScalarGridSpec(
            num_scalar_prefetch=0,
            grid=(B,),                                   # parallel over sequences
            in_specs=[
                pl.BlockSpec((1, S, DP), lambda b: (b, 0, 0)),
                pl.BlockSpec(wmat.shape, lambda b: (0, 0, 0)),   # weights broadcast
                pl.BlockSpec(wo.shape, lambda b: (0, 0, 0)),
                pl.BlockSpec(vecs.shape, lambda b: (0, 0, 0)),
            ],
            out_specs=pl.BlockSpec((1, S, DP), lambda b: (b, 0, 0)),
        ),
        compiler_params=pltpu.CompilerParams(dimension_semantics=("parallel",)),
    )(x_pad, wmat, wo, vecs)


def transformer_forward(packed, x_sbd, n_heads=N_HEADS):
    """Matches nn.TransformerEncoder forward: x is seq-first (S, B, D), no mask."""
    wmat, wo, vecs = packed
    S, B, D = x_sbd.shape
    x_bsd = jnp.transpose(x_sbd, (1, 0, 2))              # cheap layout permute (plain JAX)
    x_pad = jnp.pad(x_bsd, ((0, 0), (0, 0), (0, D_PAD - D)))  # lane-dense input
    y = transformer_encoder_padded(wmat, wo, vecs, x_pad, n_heads)
    return jnp.transpose(y[:, :, :D], (1, 0, 2))


# ---------------------------------------------------------------------------
# parameters: standard (unfused) form + padding/packing for the kernel
# ---------------------------------------------------------------------------
def init_layer_params(key, d_model, dim_ff):
    ks = jax.random.split(key, 12)
    r = lambda k, shp, s=0.05: (s * jax.random.normal(k, shp)).astype(jnp.float32)
    ones = lambda shp: jnp.ones(shp, jnp.float32)
    zeros = lambda shp: jnp.zeros(shp, jnp.float32)
    return {
        # weights stored pre-transposed so forward computes x @ W
        "wq": r(ks[0], (d_model, d_model)), "wk": r(ks[1], (d_model, d_model)),
        "wv": r(ks[2], (d_model, d_model)),
        "bq": r(ks[3], (1, d_model)), "bk": r(ks[4], (1, d_model)),
        "bv": r(ks[5], (1, d_model)),
        "wo": r(ks[6], (d_model, d_model)), "bo": r(ks[7], (1, d_model)),
        "ln1_g": ones((1, d_model)), "ln1_b": zeros((1, d_model)),
        "ff_w1": r(ks[8], (d_model, dim_ff)), "ff_b1": r(ks[9], (1, dim_ff)),
        "ff_w2": r(ks[10], (dim_ff, d_model)), "ff_b2": r(ks[11], (1, d_model)),
        "ln2_g": ones((1, d_model)), "ln2_b": zeros((1, d_model)),
    }


def pack_params(params, n_heads, d_pad=D_PAD, ff_pad=FF_PAD):
    """Pad to 128 lanes, fold 1/sqrt(hd) into Wq/bq, pack into 3 slabs per layer."""
    d = params[0]["wq"].shape[0]
    ff = params[0]["ff_w1"].shape[1]
    hd = d // n_heads
    scale = 1.0 / (hd ** 0.5)
    assert ff_pad == d_pad, "toy packing keeps ff_w2 in the same 128-row slab"
    wmats, wos, vecs = [], [], []
    for p in params:
        cols = []
        for name, sc in (("wq", scale), ("wk", 1.0), ("wv", 1.0)):
            w = p[name] * sc
            for h in range(n_heads):
                blk = jnp.zeros((d_pad, d_pad), jnp.float32)
                blk = blk.at[:d, :hd].set(w[:, h * hd:(h + 1) * hd])
                cols.append(blk)
        ff1 = jnp.zeros((d_pad, ff_pad), jnp.float32).at[:d, :ff].set(p["ff_w1"])
        ff2 = jnp.zeros((ff_pad, d_pad), jnp.float32).at[:ff, :d].set(p["ff_w2"])
        cols += [ff1, ff2]
        wmats.append(jnp.concatenate(cols, axis=1).astype(jnp.bfloat16))

        wo = jnp.zeros((n_heads * d_pad, d_pad), jnp.float32)
        for h in range(n_heads):
            wo = wo.at[h * d_pad:h * d_pad + hd, :d].set(
                p["wo"][h * hd:(h + 1) * hd, :])
        wos.append(wo.astype(jnp.bfloat16))

        v = jnp.zeros((16, d_pad), jnp.float32)
        for h in range(n_heads):
            v = v.at[h, :hd].set((p["bq"][0] * scale)[h * hd:(h + 1) * hd])
            v = v.at[n_heads + h, :hd].set(p["bk"][0, h * hd:(h + 1) * hd])
            v = v.at[2 * n_heads + h, :hd].set(p["bv"][0, h * hd:(h + 1) * hd])
        r = 3 * n_heads
        v = v.at[r, :d].set(p["bo"][0])
        v = v.at[r + 1, :d].set(p["ln1_g"][0])
        v = v.at[r + 2, :d].set(p["ln1_b"][0])
        v = v.at[r + 3, :ff].set(p["ff_b1"][0])
        v = v.at[r + 4, :d].set(p["ff_b2"][0])
        v = v.at[r + 5, :d].set(p["ln2_g"][0])
        v = v.at[r + 6, :d].set(p["ln2_b"][0])
        vecs.append(v)
    return jnp.stack(wmats), jnp.stack(wos), jnp.stack(vecs)


# ---------------------------------------------------------------------------
# pure-JAX f32 reference (unfused params, explicit scale, exact softmax)
# ---------------------------------------------------------------------------
def _layer_norm_ref(x, g, b):
    mu = jnp.mean(x, axis=-1, keepdims=True)
    xc = x - mu
    var = jnp.mean(xc * xc, axis=-1, keepdims=True)
    return xc * jax.lax.rsqrt(var + EPS) * g + b


def _ref_mha(x, p, n_heads):
    S, B, D = x.shape
    hd = D // n_heads
    scale = 1.0 / (hd ** 0.5)
    q = x @ p["wq"] + p["bq"]
    k = x @ p["wk"] + p["bk"]
    v = x @ p["wv"] + p["bv"]
    split = lambda t: t.reshape(S, B, n_heads, hd).transpose(1, 2, 0, 3)  # (B,H,S,hd)
    qh, kh, vh = split(q), split(k), split(v)
    s = jnp.einsum("bhqd,bhkd->bhqk", qh, kh) * scale
    a = jax.nn.softmax(s, axis=-1)
    o = jnp.einsum("bhqk,bhkd->bhqd", a, vh)
    o = o.transpose(2, 0, 1, 3).reshape(S, B, D)
    return o @ p["wo"] + p["bo"]


def _ref_layer(x, p, n_heads):
    a = _ref_mha(x, p, n_heads)
    x = _layer_norm_ref(x + a, p["ln1_g"], p["ln1_b"])
    h = jnp.maximum(x @ p["ff_w1"] + p["ff_b1"], 0.0)
    f = h @ p["ff_w2"] + p["ff_b2"]
    return _layer_norm_ref(x + f, p["ln2_g"], p["ln2_b"])


def reference_forward(params, x_sbd, n_heads=N_HEADS):
    x = x_sbd
    for p in params:
        x = _ref_layer(x, p, n_heads)
    return x


# ---------------------------------------------------------------------------
if __name__ == "__main__":
    B, S = 2, 8
    key = jax.random.PRNGKey(0)
    k_p, k_x = jax.random.split(key)
    layer_keys = jax.random.split(k_p, N_LAYERS)

    params = [init_layer_params(layer_keys[l], D_MODEL, DIM_FF)
              for l in range(N_LAYERS)]
    packed = pack_params(params, N_HEADS)

    # seq-first (S, B, D) input, matching nn.TransformerEncoder's default layout
    x = jax.random.normal(k_x, (S, B, D_MODEL), jnp.float32)

    out = transformer_forward(packed, x)
    jax.block_until_ready(out)

    ref = reference_forward(params, x)
    assert out.shape == (S, B, D_MODEL)
    max_err = float(jnp.max(jnp.abs(out - ref)))
    # bf16 matmul operands (f32 accumulate) vs the f32 reference -> loosened tol
    assert jnp.allclose(out, ref, atol=3e-2, rtol=3e-2), max_err

    print("KERNEL_OK")
</pallas_src>

<mosaic_0001>
module attributes {stable_mosaic.version = 11 : i64} {
  func.func @_encoder_stack_kernel(%arg0: i32, %arg1: memref<1x8x128xf32, #tpu.memory_space<vmem>>, %arg2: memref<2x128x1024xbf16, #tpu.memory_space<vmem>>, %arg3: memref<2x256x128xbf16, #tpu.memory_space<vmem>>, %arg4: memref<2x16x128xf32, #tpu.memory_space<vmem>>, %arg5: memref<1x8x128xf32, #tpu.memory_space<vmem>>) attributes {dimension_semantics = [#tpu.dimension_semantics<parallel>], iteration_bounds = array<i64: 2>, scalar_prefetch = 0 : i64, scratch_operands = 0 : i64, tpu.core_type = #tpu.core_type<tc>, window_params = [{transform_indices = @transform_0, window_bounds = array<i64: 1, 8, 128>}, {pipeline_mode = #tpu.pipeline_mode<synchronous>, transform_indices = @transform_1, window_bounds = array<i64: 2, 128, 1024>}, {pipeline_mode = #tpu.pipeline_mode<synchronous>, transform_indices = @transform_2, window_bounds = array<i64: 2, 256, 128>}, {pipeline_mode = #tpu.pipeline_mode<synchronous>, transform_indices = @transform_3, window_bounds = array<i64: 2, 16, 128>}, {transform_indices = @transform_4, window_bounds = array<i64: 1, 8, 128>}]} {
    %c0 = arith.constant 0 : index
    %c0_0 = arith.constant 0 : index
    %c0_1 = arith.constant 0 : index
    %0 = vector.load %arg1[%c0, %c0_0, %c0_1] : memref<1x8x128xf32, #tpu.memory_space<vmem>>, vector<1x8x128xf32>
    %1 = vector.shape_cast %0 : vector<1x8x128xf32> to vector<8x128xf32>
    %2 = tpu.iota {dimensions = array<i32: 1>} : vector<1x128xi32>
    %c32_i32 = arith.constant 32 : i32
    %3 = vector.broadcast %c32_i32 : i32 to vector<1x128xi32>
    %4 = arith.cmpi slt, %2, %3 : vector<1x128xi32>
    %5 = arith.extui %4 : vector<1x128xi1> to vector<1x128xi32>
    %6 = arith.sitofp %5 : vector<1x128xi32> to vector<1x128xf32>
    %c0_2 = arith.constant 0 : index
    %c0_3 = arith.constant 0 : index
    %c0_4 = arith.constant 0 : index
    %7 = vector.load %arg2[%c0_2, %c0_3, %c0_4] : memref<2x128x1024xbf16, #tpu.memory_space<vmem>>, vector<1x128x1024xbf16>
    %8 = vector.shape_cast %7 : vector<1x128x1024xbf16> to vector<128x1024xbf16>
    %c0_5 = arith.constant 0 : index
    %c0_6 = arith.constant 0 : index
    %c0_7 = arith.constant 0 : index
    %9 = vector.load %arg3[%c0_5, %c0_6, %c0_7] : memref<2x256x128xbf16, #tpu.memory_space<vmem>>, vector<1x256x128xbf16>
    %10 = vector.shape_cast %9 : vector<1x256x128xbf16> to vector<256x128xbf16>
    %c0_8 = arith.constant 0 : index
    %c0_9 = arith.constant 0 : index
    %c0_10 = arith.constant 0 : index
    %11 = vector.load %arg4[%c0_8, %c0_9, %c0_10] : memref<2x16x128xf32, #tpu.memory_space<vmem>>, vector<1x16x128xf32>
    %12 = vector.shape_cast %11 : vector<1x16x128xf32> to vector<16x128xf32>
    %13 = arith.truncf %1 : vector<8x128xf32> to vector<8x128xbf16>
    %14 = vector.extract_strided_slice %8 {offsets = [0, 0], sizes = [128, 768], strides = [1, 1]} : vector<128x1024xbf16> to vector<128x768xbf16>
    %cst = arith.constant dense<0.000000e+00> : vector<8x768xf32>
    %15 = tpu.matmul %13, %14, %cst {dimension_numbers = #tpu.dot_dimension_numbers<[1], [0], [0], [1], [0, 0, 1, 1], [], []>} : vector<8x128xbf16>, vector<128x768xbf16>, vector<8x768xf32> -> vector<8x768xf32>
    %cst_11 = arith.constant 0.000000e+00 : f32
    %16 = vector.broadcast %cst_11 : f32 to vector<8x128xf32>
    %17 = vector.extract_strided_slice %15 {offsets = [0, 0], sizes = [8, 128], strides = [1, 1]} : vector<8x768xf32> to vector<8x128xf32>
    %18 = vector.extract_strided_slice %12 {offsets = [0, 0], sizes = [1, 128], strides = [1, 1]} : vector<16x128xf32> to vector<1x128xf32>
    %19 = vector.broadcast %18 : vector<1x128xf32> to vector<8x128xf32>
    %20 = arith.addf %17, %19 : vector<8x128xf32>
    %21 = vector.extract_strided_slice %15 {offsets = [0, 256], sizes = [8, 128], strides = [1, 1]} : vector<8x768xf32> to vector<8x128xf32>
    %22 = vector.extract_strided_slice %12 {offsets = [2, 0], sizes = [1, 128], strides = [1, 1]} : vector<16x128xf32> to vector<1x128xf32>
    %23 = vector.broadcast %22 : vector<1x128xf32> to vector<8x128xf32>
    %24 = arith.addf %21, %23 : vector<8x128xf32>
    %25 = vector.extract_strided_slice %15 {offsets = [0, 512], sizes = [8, 128], strides = [1, 1]} : vector<8x768xf32> to vector<8x128xf32>
    %26 = vector.extract_strided_slice %12 {offsets = [4, 0], sizes = [1, 128], strides = [1, 1]} : vector<16x128xf32> to vector<1x128xf32>
    %27 = vector.broadcast %26 : vector<1x128xf32> to vector<8x128xf32>
    %28 = arith.addf %25, %27 : vector<8x128xf32>
    %29 = arith.truncf %20 : vector<8x128xf32> to vector<8x128xbf16>
    %30 = arith.truncf %24 : vector<8x128xf32> to vector<8x128xbf16>
    "tpu.trace_start"() <{level = 10 : i32, message = "qd,kd->qk"}> : () -> ()
    %cst_12 = arith.constant dense<0.000000e+00> : vector<8x8xf32>
    %31 = tpu.matmul %29, %30, %cst_12 {dimension_numbers = #tpu.dot_dimension_numbers<[1], [1], [0], [0], [0, 0, 1, 0], [], []>} : vector<8x128xbf16>, vector<8x128xbf16>, vector<8x8xf32> -> vector<8x8xf32>
    "tpu.trace_stop"() : () -> ()
    %cst_13 = arith.constant dense<0xFF800000> : vector<8xf32>
    %32 = vector.multi_reduction <maximumf>, %31, %cst_13 [1] : vector<8x8xf32> to vector<8xf32>
    %33 = vector.shape_cast %32 : vector<8xf32> to vector<8x1xf32>
    %34 = vector.broadcast %33 : vector<8x1xf32> to vector<8x8xf32>
    %35 = arith.subf %31, %34 : vector<8x8xf32>
    %36 = math.exp %35 : vector<8x8xf32>
    %cst_14 = arith.constant dense<0.000000e+00> : vector<8xf32>
    %37 = vector.multi_reduction <add>, %36, %cst_14 [1] : vector<8x8xf32> to vector<8xf32>
    %38 = vector.shape_cast %37 : vector<8xf32> to vector<8x1xf32>
    %39 = vector.broadcast %38 : vector<8x1xf32> to vector<8x8xf32>
    %40 = arith.divf %36, %39 : vector<8x8xf32>
    %41 = arith.truncf %40 : vector<8x8xf32> to vector<8x8xbf16>
    %42 = arith.truncf %28 : vector<8x128xf32> to vector<8x128xbf16>
    %cst_15 = arith.constant dense<0.000000e+00> : vector<8x128xf32>
    %43 = tpu.matmul %41, %42, %cst_15 {dimension_numbers = #tpu.dot_dimension_numbers<[1], [0], [0], [1], [0, 0, 1, 1], [], []>} : vector<8x8xbf16>, vector<8x128xbf16>, vector<8x128xf32> -> vector<8x128xf32>
    %44 = arith.truncf %43 : vector<8x128xf32> to vector<8x128xbf16>
    %45 = vector.extract_strided_slice %10 {offsets = [0, 0], sizes = [128, 128], strides = [1, 1]} : vector<256x128xbf16> to vector<128x128xbf16>
    %cst_16 = arith.constant dense<0.000000e+00> : vector<8x128xf32>
    %46 = tpu.matmul %44, %45, %cst_16 {dimension_numbers = #tpu.dot_dimension_numbers<[1], [0], [0], [1], [0, 0, 1, 1], [], []>} : vector<8x128xbf16>, vector<128x128xbf16>, vector<8x128xf32> -> vector<8x128xf32>
    %47 = arith.addf %16, %46 : vector<8x128xf32>
    %48 = vector.extract_strided_slice %15 {offsets = [0, 128], sizes = [8, 128], strides = [1, 1]} : vector<8x768xf32> to vector<8x128xf32>
    %49 = vector.extract_strided_slice %12 {offsets = [1, 0], sizes = [1, 128], strides = [1, 1]} : vector<16x128xf32> to vector<1x128xf32>
    %50 = vector.broadcast %49 : vector<1x128xf32> to vector<8x128xf32>
    %51 = arith.addf %48, %50 : vector<8x128xf32>
    %52 = vector.extract_strided_slice %15 {offsets = [0, 384], sizes = [8, 128], strides = [1, 1]} : vector<8x768xf32> to vector<8x128xf32>
    %53 = vector.extract_strided_slice %12 {offsets = [3, 0], sizes = [1, 128], strides = [1, 1]} : vector<16x128xf32> to vector<1x128xf32>
    %54 = vector.broadcast %53 : vector<1x128xf32> to vector<8x128xf32>
    %55 = arith.addf %52, %54 : vector<8x128xf32>
    %56 = vector.extract_strided_slice %15 {offsets = [0, 640], sizes = [8, 128], strides = [1, 1]} : vector<8x768xf32> to vector<8x128xf32>
    %57 = vector.extract_strided_slice %12 {offsets = [5, 0], sizes = [1, 128], strides = [1, 1]} : vector<16x128xf32> to vector<1x128xf32>
    %58 = vector.broadcast %57 : vector<1x128xf32> to vector<8x128xf32>
    %59 = arith.addf %56, %58 : vector<8x128xf32>
    %60 = arith.truncf %51 : vector<8x128xf32> to vector<8x128xbf16>
    %61 = arith.truncf %55 : vector<8x128xf32> to vector<8x128xbf16>
    "tpu.trace_start"() <{level = 10 : i32, message = "qd,kd->qk"}> : () -> ()
    %cst_17 = arith.constant dense<0.000000e+00> : vector<8x8xf32>
    %62 = tpu.matmul %60, %61, %cst_17 {dimension_numbers = #tpu.dot_dimension_numbers<[1], [1], [0], [0], [0, 0, 1, 0], [], []>} : vector<8x128xbf16>, vector<8x128xbf16>, vector<8x8xf32> -> vector<8x8xf32>
    "tpu.trace_stop"() : () -> ()
    %cst_18 = arith.constant dense<0xFF800000> : vector<8xf32>
    %63 = vector.multi_reduction <maximumf>, %62, %cst_18 [1] : vector<8x8xf32> to vector<8xf32>
    %64 = vector.shape_cast %63 : vector<8xf32> to vector<8x1xf32>
    %65 = vector.broadcast %64 : vector<8x1xf32> to vector<8x8xf32>
    %66 = arith.subf %62, %65 : vector<8x8xf32>
    %67 = math.exp %66 : vector<8x8xf32>
    %cst_19 = arith.constant dense<0.000000e+00> : vector<8xf32>
    %68 = vector.multi_reduction <add>, %67, %cst_19 [1] : vector<8x8xf32> to vector<8xf32>
    %69 = vector.shape_cast %68 : vector<8xf32> to vector<8x1xf32>
    %70 = vector.broadcast %69 : vector<8x1xf32> to vector<8x8xf32>
    %71 = arith.divf %67, %70 : vector<8x8xf32>
    %72 = arith.truncf %71 : vector<8x8xf32> to vector<8x8xbf16>
    %73 = arith.truncf %59 : vector<8x128xf32> to vector<8x128xbf16>
    %cst_20 = arith.constant dense<0.000000e+00> : vector<8x128xf32>
    %74 = tpu.matmul %72, %73, %cst_20 {dimension_numbers = #tpu.dot_dimension_numbers<[1], [0], [0], [1], [0, 0, 1, 1], [], []>} : vector<8x8xbf16>, vector<8x128xbf16>, vector<8x128xf32> -> vector<8x128xf32>
    %75 = arith.truncf %74 : vector<8x128xf32> to vector<8x128xbf16>
    %76 = vector.extract_strided_slice %10 {offsets = [128, 0], sizes = [128, 128], strides = [1, 1]} : vector<256x128xbf16> to vector<128x128xbf16>
    %cst_21 = arith.constant dense<0.000000e+00> : vector<8x128xf32>
    %77 = tpu.matmul %75, %76, %cst_21 {dimension_numbers = #tpu.dot_dimension_numbers<[1], [0], [0], [1], [0, 0, 1, 1], [], []>} : vector<8x128xbf16>, vector<128x128xbf16>, vector<8x128xf32> -> vector<8x128xf32>
    %78 = arith.addf %47, %77 : vector<8x128xf32>
    %79 = vector.extract_strided_slice %12 {offsets = [6, 0], sizes = [1, 128], strides = [1, 1]} : vector<16x128xf32> to vector<1x128xf32>
    %80 = vector.broadcast %79 : vector<1x128xf32> to vector<8x128xf32>
    %81 = arith.addf %78, %80 : vector<8x128xf32>
    %82 = arith.addf %1, %81 : vector<8x128xf32>
    %83 = vector.extract_strided_slice %12 {offsets = [7, 0], sizes = [1, 128], strides = [1, 1]} : vector<16x128xf32> to vector<1x128xf32>
    %84 = vector.extract_strided_slice %12 {offsets = [8, 0], sizes = [1, 128], strides = [1, 1]} : vector<16x128xf32> to vector<1x128xf32>
    %cst_22 = arith.constant dense<0.000000e+00> : vector<8xf32>
    %85 = vector.multi_reduction <add>, %82, %cst_22 [1] : vector<8x128xf32> to vector<8xf32>
    %86 = vector.shape_cast %85 : vector<8xf32> to vector<8x1xf32>
    %cst_23 = arith.constant 3.125000e-02 : f32
    %87 = vector.broadcast %cst_23 : f32 to vector<8x1xf32>
    %88 = arith.mulf %86, %87 : vector<8x1xf32>
    %89 = vector.broadcast %88 : vector<8x1xf32> to vector<8x128xf32>
    %90 = arith.subf %82, %89 : vector<8x128xf32>
    %91 = vector.broadcast %6 : vector<1x128xf32> to vector<8x128xf32>
    %92 = arith.mulf %90, %91 : vector<8x128xf32>
    %93 = arith.mulf %92, %92 : vector<8x128xf32>
    %cst_24 = arith.constant dense<0.000000e+00> : vector<8xf32>
    %94 = vector.multi_reduction <add>, %93, %cst_24 [1] : vector<8x128xf32> to vector<8xf32>
    %95 = vector.shape_cast %94 : vector<8xf32> to vector<8x1xf32>
    %cst_25 = arith.constant 3.125000e-02 : f32
    %96 = vector.broadcast %cst_25 : f32 to vector<8x1xf32>
    %97 = arith.mulf %95, %96 : vector<8x1xf32>
    %cst_26 = arith.constant 9.99999974E-6 : f32
    %98 = vector.broadcast %cst_26 : f32 to vector<8x1xf32>
    %99 = arith.addf %97, %98 : vector<8x1xf32>
    %100 = math.rsqrt %99 : vector<8x1xf32>
    %101 = vector.broadcast %100 : vector<8x1xf32> to vector<8x128xf32>
    %102 = arith.mulf %92, %101 : vector<8x128xf32>
    %103 = vector.broadcast %83 : vector<1x128xf32> to vector<8x128xf32>
    %104 = arith.mulf %102, %103 : vector<8x128xf32>
    %105 = vector.broadcast %84 : vector<1x128xf32> to vector<8x128xf32>
    %106 = arith.addf %104, %105 : vector<8x128xf32>
    %107 = arith.truncf %106 : vector<8x128xf32> to vector<8x128xbf16>
    %108 = vector.extract_strided_slice %8 {offsets = [0, 768], sizes = [128, 128], strides = [1, 1]} : vector<128x1024xbf16> to vector<128x128xbf16>
    %cst_27 = arith.constant dense<0.000000e+00> : vector<8x128xf32>
    %109 = tpu.matmul %107, %108, %cst_27 {dimension_numbers = #tpu.dot_dimension_numbers<[1], [0], [0], [1], [0, 0, 1, 1], [], []>} : vector<8x128xbf16>, vector<128x128xbf16>, vector<8x128xf32> -> vector<8x128xf32>
    %110 = vector.extract_strided_slice %12 {offsets = [9, 0], sizes = [1, 128], strides = [1, 1]} : vector<16x128xf32> to vector<1x128xf32>
    %111 = vector.broadcast %110 : vector<1x128xf32> to vector<8x128xf32>
    %112 = arith.addf %109, %111 : vector<8x128xf32>
    %cst_28 = arith.constant 0.000000e+00 : f32
    %113 = vector.broadcast %cst_28 : f32 to vector<8x128xf32>
    %114 = arith.maximumf %112, %113 : vector<8x128xf32>
    %115 = arith.truncf %114 : vector<8x128xf32> to vector<8x128xbf16>
    %116 = vector.extract_strided_slice %8 {offsets = [0, 896], sizes = [128, 128], strides = [1, 1]} : vector<128x1024xbf16> to vector<128x128xbf16>
    %cst_29 = arith.constant dense<0.000000e+00> : vector<8x128xf32>
    %117 = tpu.matmul %115, %116, %cst_29 {dimension_numbers = #tpu.dot_dimension_numbers<[1], [0], [0], [1], [0, 0, 1, 1], [], []>} : vector<8x128xbf16>, vector<128x128xbf16>, vector<8x128xf32> -> vector<8x128xf32>
    %118 = vector.extract_strided_slice %12 {offsets = [10, 0], sizes = [1, 128], strides = [1, 1]} : vector<16x128xf32> to vector<1x128xf32>
    %119 = vector.broadcast %118 : vector<1x128xf32> to vector<8x128xf32>
    %120 = arith.addf %117, %119 : vector<8x128xf32>
    %121 = arith.addf %106, %120 : vector<8x128xf32>
    %122 = vector.extract_strided_slice %12 {offsets = [11, 0], sizes = [1, 128], strides = [1, 1]} : vector<16x128xf32> to vector<1x128xf32>
    %123 = vector.extract_strided_slice %12 {offsets = [12, 0], sizes = [1, 128], strides = [1, 1]} : vector<16x128xf32> to vector<1x128xf32>
    %cst_30 = arith.constant dense<0.000000e+00> : vector<8xf32>
    %124 = vector.multi_reduction <add>, %121, %cst_30 [1] : vector<8x128xf32> to vector<8xf32>
    %125 = vector.shape_cast %124 : vector<8xf32> to vector<8x1xf32>
    %cst_31 = arith.constant 3.125000e-02 : f32
    %126 = vector.broadcast %cst_31 : f32 to vector<8x1xf32>
    %127 = arith.mulf %125, %126 : vector<8x1xf32>
    %128 = vector.broadcast %127 : vector<8x1xf32> to vector<8x128xf32>
    %129 = arith.subf %121, %128 : vector<8x128xf32>
    %130 = vector.broadcast %6 : vector<1x128xf32> to vector<8x128xf32>
    %131 = arith.mulf %129, %130 : vector<8x128xf32>
    %132 = arith.mulf %131, %131 : vector<8x128xf32>
    %cst_32 = arith.constant dense<0.000000e+00> : vector<8xf32>
    %133 = vector.multi_reduction <add>, %132, %cst_32 [1] : vector<8x128xf32> to vector<8xf32>
    %134 = vector.shape_cast %133 : vector<8xf32> to vector<8x1xf32>
    %cst_33 = arith.constant 3.125000e-02 : f32
    %135 = vector.broadcast %cst_33 : f32 to vector<8x1xf32>
    %136 = arith.mulf %134, %135 : vector<8x1xf32>
    %cst_34 = arith.constant 9.99999974E-6 : f32
    %137 = vector.broadcast %cst_34 : f32 to vector<8x1xf32>
    %138 = arith.addf %136, %137 : vector<8x1xf32>
    %139 = math.rsqrt %138 : vector<8x1xf32>
    %140 = vector.broadcast %139 : vector<8x1xf32> to vector<8x128xf32>
    %141 = arith.mulf %131, %140 : vector<8x128xf32>
    %142 = vector.broadcast %122 : vector<1x128xf32> to vector<8x128xf32>
    %143 = arith.mulf %141, %142 : vector<8x128xf32>
    %144 = vector.broadcast %123 : vector<1x128xf32> to vector<8x128xf32>
    %145 = arith.addf %143, %144 : vector<8x128xf32>
    %c1 = arith.constant 1 : index
    %c0_35 = arith.constant 0 : index
    %c0_36 = arith.constant 0 : index
    %146 = vector.load %arg2[%c1, %c0_35, %c0_36] : memref<2x128x1024xbf16, #tpu.memory_space<vmem>>, vector<1x128x1024xbf16>
    %147 = vector.shape_cast %146 : vector<1x128x1024xbf16> to vector<128x1024xbf16>
    %c1_37 = arith.constant 1 : index
    %c0_38 = arith.constant 0 : index
    %c0_39 = arith.constant 0 : index
    %148 = vector.load %arg3[%c1_37, %c0_38, %c0_39] : memref<2x256x128xbf16, #tpu.memory_space<vmem>>, vector<1x256x128xbf16>
    %149 = vector.shape_cast %148 : vector<1x256x128xbf16> to vector<256x128xbf16>
    %c1_40 = arith.constant 1 : index
    %c0_41 = arith.constant 0 : index
    %c0_42 = arith.constant 0 : index
    %150 = vector.load %arg4[%c1_40, %c0_41, %c0_42] : memref<2x16x128xf32, #tpu.memory_space<vmem>>, vector<1x16x128xf32>
    %151 = vector.shape_cast %150 : vector<1x16x128xf32> to vector<16x128xf32>
    %152 = arith.truncf %145 : vector<8x128xf32> to vector<8x128xbf16>
    %153 = vector.extract_strided_slice %147 {offsets = [0, 0], sizes = [128, 768], strides = [1, 1]} : vector<128x1024xbf16> to vector<128x768xbf16>
    %cst_43 = arith.constant dense<0.000000e+00> : vector<8x768xf32>
    %154 = tpu.matmul %152, %153, %cst_43 {dimension_numbers = #tpu.dot_dimension_numbers<[1], [0], [0], [1], [0, 0, 1, 1], [], []>} : vector<8x128xbf16>, vector<128x768xbf16>, vector<8x768xf32> -> vector<8x768xf32>
    %cst_44 = arith.constant 0.000000e+00 : f32
    %155 = vector.broadcast %cst_44 : f32 to vector<8x128xf32>
    %156 = vector.extract_strided_slice %154 {offsets = [0, 0], sizes = [8, 128], strides = [1, 1]} : vector<8x768xf32> to vector<8x128xf32>
    %157 = vector.extract_strided_slice %151 {offsets = [0, 0], sizes = [1, 128], strides = [1, 1]} : vector<16x128xf32> to vector<1x128xf32>
    %158 = vector.broadcast %157 : vector<1x128xf32> to vector<8x128xf32>
    %159 = arith.addf %156, %158 : vector<8x128xf32>
    %160 = vector.extract_strided_slice %154 {offsets = [0, 256], sizes = [8, 128], strides = [1, 1]} : vector<8x768xf32> to vector<8x128xf32>
    %161 = vector.extract_strided_slice %151 {offsets = [2, 0], sizes = [1, 128], strides = [1, 1]} : vector<16x128xf32> to vector<1x128xf32>
    %162 = vector.broadcast %161 : vector<1x128xf32> to vector<8x128xf32>
    %163 = arith.addf %160, %162 : vector<8x128xf32>
    %164 = vector.extract_strided_slice %154 {offsets = [0, 512], sizes = [8, 128], strides = [1, 1]} : vector<8x768xf32> to vector<8x128xf32>
    %165 = vector.extract_strided_slice %151 {offsets = [4, 0], sizes = [1, 128], strides = [1, 1]} : vector<16x128xf32> to vector<1x128xf32>
    %166 = vector.broadcast %165 : vector<1x128xf32> to vector<8x128xf32>
    %167 = arith.addf %164, %166 : vector<8x128xf32>
    %168 = arith.truncf %159 : vector<8x128xf32> to vector<8x128xbf16>
    %169 = arith.truncf %163 : vector<8x128xf32> to vector<8x128xbf16>
    "tpu.trace_start"() <{level = 10 : i32, message = "qd,kd->qk"}> : () -> ()
    %cst_45 = arith.constant dense<0.000000e+00> : vector<8x8xf32>
    %170 = tpu.matmul %168, %169, %cst_45 {dimension_numbers = #tpu.dot_dimension_numbers<[1], [1], [0], [0], [0, 0, 1, 0], [], []>} : vector<8x128xbf16>, vector<8x128xbf16>, vector<8x8xf32> -> vector<8x8xf32>
    "tpu.trace_stop"() : () -> ()
    %cst_46 = arith.constant dense<0xFF800000> : vector<8xf32>
    %171 = vector.multi_reduction <maximumf>, %170, %cst_46 [1] : vector<8x8xf32> to vector<8xf32>
    %172 = vector.shape_cast %171 : vector<8xf32> to vector<8x1xf32>
    %173 = vector.broadcast %172 : vector<8x1xf32> to vector<8x8xf32>
    %174 = arith.subf %170, %173 : vector<8x8xf32>
    %175 = math.exp %174 : vector<8x8xf32>
    %cst_47 = arith.constant dense<0.000000e+00> : vector<8xf32>
    %176 = vector.multi_reduction <add>, %175, %cst_47 [1] : vector<8x8xf32> to vector<8xf32>
    %177 = vector.shape_cast %176 : vector<8xf32> to vector<8x1xf32>
    %178 = vector.broadcast %177 : vector<8x1xf32> to vector<8x8xf32>
    %179 = arith.divf %175, %178 : vector<8x8xf32>
    %180 = arith.truncf %179 : vector<8x8xf32> to vector<8x8xbf16>
    %181 = arith.truncf %167 : vector<8x128xf32> to vector<8x128xbf16>
    %cst_48 = arith.constant dense<0.000000e+00> : vector<8x128xf32>
    %182 = tpu.matmul %180, %181, %cst_48 {dimension_numbers = #tpu.dot_dimension_numbers<[1], [0], [0], [1], [0, 0, 1, 1], [], []>} : vector<8x8xbf16>, vector<8x128xbf16>, vector<8x128xf32> -> vector<8x128xf32>
    %183 = arith.truncf %182 : vector<8x128xf32> to vector<8x128xbf16>
    %184 = vector.extract_strided_slice %149 {offsets = [0, 0], sizes = [128, 128], strides = [1, 1]} : vector<256x128xbf16> to vector<128x128xbf16>
    %cst_49 = arith.constant dense<0.000000e+00> : vector<8x128xf32>
    %185 = tpu.matmul %183, %184, %cst_49 {dimension_numbers = #tpu.dot_dimension_numbers<[1], [0], [0], [1], [0, 0, 1, 1], [], []>} : vector<8x128xbf16>, vector<128x128xbf16>, vector<8x128xf32> -> vector<8x128xf32>
    %186 = arith.addf %155, %185 : vector<8x128xf32>
    %187 = vector.extract_strided_slice %154 {offsets = [0, 128], sizes = [8, 128], strides = [1, 1]} : vector<8x768xf32> to vector<8x128xf32>
    %188 = vector.extract_strided_slice %151 {offsets = [1, 0], sizes = [1, 128], strides = [1, 1]} : vector<16x128xf32> to vector<1x128xf32>
    %189 = vector.broadcast %188 : vector<1x128xf32> to vector<8x128xf32>
    %190 = arith.addf %187, %189 : vector<8x128xf32>
    %191 = vector.extract_strided_slice %154 {offsets = [0, 384], sizes = [8, 128], strides = [1, 1]} : vector<8x768xf32> to vector<8x128xf32>
    %192 = vector.extract_strided_slice %151 {offsets = [3, 0], sizes = [1, 128], strides = [1, 1]} : vector<16x128xf32> to vector<1x128xf32>
    %193 = vector.broadcast %192 : vector<1x128xf32> to vector<8x128xf32>
    %194 = arith.addf %191, %193 : vector<8x128xf32>
    %195 = vector.extract_strided_slice %154 {offsets = [0, 640], sizes = [8, 128], strides = [1, 1]} : vector<8x768xf32> to vector<8x128xf32>
    %196 = vector.extract_strided_slice %151 {offsets = [5, 0], sizes = [1, 128], strides = [1, 1]} : vector<16x128xf32> to vector<1x128xf32>
    %197 = vector.broadcast %196 : vector<1x128xf32> to vector<8x128xf32>
    %198 = arith.addf %195, %197 : vector<8x128xf32>
    %199 = arith.truncf %190 : vector<8x128xf32> to vector<8x128xbf16>
    %200 = arith.truncf %194 : vector<8x128xf32> to vector<8x128xbf16>
    "tpu.trace_start"() <{level = 10 : i32, message = "qd,kd->qk"}> : () -> ()
    %cst_50 = arith.constant dense<0.000000e+00> : vector<8x8xf32>
    %201 = tpu.matmul %199, %200, %cst_50 {dimension_numbers = #tpu.dot_dimension_numbers<[1], [1], [0], [0], [0, 0, 1, 0], [], []>} : vector<8x128xbf16>, vector<8x128xbf16>, vector<8x8xf32> -> vector<8x8xf32>
    "tpu.trace_stop"() : () -> ()
    %cst_51 = arith.constant dense<0xFF800000> : vector<8xf32>
    %202 = vector.multi_reduction <maximumf>, %201, %cst_51 [1] : vector<8x8xf32> to vector<8xf32>
    %203 = vector.shape_cast %202 : vector<8xf32> to vector<8x1xf32>
    %204 = vector.broadcast %203 : vector<8x1xf32> to vector<8x8xf32>
    %205 = arith.subf %201, %204 : vector<8x8xf32>
    %206 = math.exp %205 : vector<8x8xf32>
    %cst_52 = arith.constant dense<0.000000e+00> : vector<8xf32>
    %207 = vector.multi_reduction <add>, %206, %cst_52 [1] : vector<8x8xf32> to vector<8xf32>
    %208 = vector.shape_cast %207 : vector<8xf32> to vector<8x1xf32>
    %209 = vector.broadcast %208 : vector<8x1xf32> to vector<8x8xf32>
    %210 = arith.divf %206, %209 : vector<8x8xf32>
    %211 = arith.truncf %210 : vector<8x8xf32> to vector<8x8xbf16>
    %212 = arith.truncf %198 : vector<8x128xf32> to vector<8x128xbf16>
    %cst_53 = arith.constant dense<0.000000e+00> : vector<8x128xf32>
    %213 = tpu.matmul %211, %212, %cst_53 {dimension_numbers = #tpu.dot_dimension_numbers<[1], [0], [0], [1], [0, 0, 1, 1], [], []>} : vector<8x8xbf16>, vector<8x128xbf16>, vector<8x128xf32> -> vector<8x128xf32>
    %214 = arith.truncf %213 : vector<8x128xf32> to vector<8x128xbf16>
    %215 = vector.extract_strided_slice %149 {offsets = [128, 0], sizes = [128, 128], strides = [1, 1]} : vector<256x128xbf16> to vector<128x128xbf16>
    %cst_54 = arith.constant dense<0.000000e+00> : vector<8x128xf32>
    %216 = tpu.matmul %214, %215, %cst_54 {dimension_numbers = #tpu.dot_dimension_numbers<[1], [0], [0], [1], [0, 0, 1, 1], [], []>} : vector<8x128xbf16>, vector<128x128xbf16>, vector<8x128xf32> -> vector<8x128xf32>
    %217 = arith.addf %186, %216 : vector<8x128xf32>
    %218 = vector.extract_strided_slice %151 {offsets = [6, 0], sizes = [1, 128], strides = [1, 1]} : vector<16x128xf32> to vector<1x128xf32>
    %219 = vector.broadcast %218 : vector<1x128xf32> to vector<8x128xf32>
    %220 = arith.addf %217, %219 : vector<8x128xf32>
    %221 = arith.addf %145, %220 : vector<8x128xf32>
    %222 = vector.extract_strided_slice %151 {offsets = [7, 0], sizes = [1, 128], strides = [1, 1]} : vector<16x128xf32> to vector<1x128xf32>
    %223 = vector.extract_strided_slice %151 {offsets = [8, 0], sizes = [1, 128], strides = [1, 1]} : vector<16x128xf32> to vector<1x128xf32>
    %cst_55 = arith.constant dense<0.000000e+00> : vector<8xf32>
    %224 = vector.multi_reduction <add>, %221, %cst_55 [1] : vector<8x128xf32> to vector<8xf32>
    %225 = vector.shape_cast %224 : vector<8xf32> to vector<8x1xf32>
    %cst_56 = arith.constant 3.125000e-02 : f32
    %226 = vector.broadcast %cst_56 : f32 to vector<8x1xf32>
    %227 = arith.mulf %225, %226 : vector<8x1xf32>
    %228 = vector.broadcast %227 : vector<8x1xf32> to vector<8x128xf32>
    %229 = arith.subf %221, %228 : vector<8x128xf32>
    %230 = vector.broadcast %6 : vector<1x128xf32> to vector<8x128xf32>
    %231 = arith.mulf %229, %230 : vector<8x128xf32>
    %232 = arith.mulf %231, %231 : vector<8x128xf32>
    %cst_57 = arith.constant dense<0.000000e+00> : vector<8xf32>
    %233 = vector.multi_reduction <add>, %232, %cst_57 [1] : vector<8x128xf32> to vector<8xf32>
    %234 = vector.shape_cast %233 : vector<8xf32> to vector<8x1xf32>
    %cst_58 = arith.constant 3.125000e-02 : f32
    %235 = vector.broadcast %cst_58 : f32 to vector<8x1xf32>
    %236 = arith.mulf %234, %235 : vector<8x1xf32>
    %cst_59 = arith.constant 9.99999974E-6 : f32
    %237 = vector.broadcast %cst_59 : f32 to vector<8x1xf32>
    %238 = arith.addf %236, %237 : vector<8x1xf32>
    %239 = math.rsqrt %238 : vector<8x1xf32>
    %240 = vector.broadcast %239 : vector<8x1xf32> to vector<8x128xf32>
    %241 = arith.mulf %231, %240 : vector<8x128xf32>
    %242 = vector.broadcast %222 : vector<1x128xf32> to vector<8x128xf32>
    %243 = arith.mulf %241, %242 : vector<8x128xf32>
    %244 = vector.broadcast %223 : vector<1x128xf32> to vector<8x128xf32>
    %245 = arith.addf %243, %244 : vector<8x128xf32>
    %246 = arith.truncf %245 : vector<8x128xf32> to vector<8x128xbf16>
    %247 = vector.extract_strided_slice %147 {offsets = [0, 768], sizes = [128, 128], strides = [1, 1]} : vector<128x1024xbf16> to vector<128x128xbf16>
    %cst_60 = arith.constant dense<0.000000e+00> : vector<8x128xf32>
    %248 = tpu.matmul %246, %247, %cst_60 {dimension_numbers = #tpu.dot_dimension_numbers<[1], [0], [0], [1], [0, 0, 1, 1], [], []>} : vector<8x128xbf16>, vector<128x128xbf16>, vector<8x128xf32> -> vector<8x128xf32>
    %249 = vector.extract_strided_slice %151 {offsets = [9, 0], sizes = [1, 128], strides = [1, 1]} : vector<16x128xf32> to vector<1x128xf32>
    %250 = vector.broadcast %249 : vector<1x128xf32> to vector<8x128xf32>
    %251 = arith.addf %248, %250 : vector<8x128xf32>
    %cst_61 = arith.constant 0.000000e+00 : f32
    %252 = vector.broadcast %cst_61 : f32 to vector<8x128xf32>
    %253 = arith.maximumf %251, %252 : vector<8x128xf32>
    %254 = arith.truncf %253 : vector<8x128xf32> to vector<8x128xbf16>
    %255 = vector.extract_strided_slice %147 {offsets = [0, 896], sizes = [128, 128], strides = [1, 1]} : vector<128x1024xbf16> to vector<128x128xbf16>
    %cst_62 = arith.constant dense<0.000000e+00> : vector<8x128xf32>
    %256 = tpu.matmul %254, %255, %cst_62 {dimension_numbers = #tpu.dot_dimension_numbers<[1], [0], [0], [1], [0, 0, 1, 1], [], []>} : vector<8x128xbf16>, vector<128x128xbf16>, vector<8x128xf32> -> vector<8x128xf32>
    %257 = vector.extract_strided_slice %151 {offsets = [10, 0], sizes = [1, 128], strides = [1, 1]} : vector<16x128xf32> to vector<1x128xf32>
    %258 = vector.broadcast %257 : vector<1x128xf32> to vector<8x128xf32>
    %259 = arith.addf %256, %258 : vector<8x128xf32>
    %260 = arith.addf %245, %259 : vector<8x128xf32>
    %261 = vector.extract_strided_slice %151 {offsets = [11, 0], sizes = [1, 128], strides = [1, 1]} : vector<16x128xf32> to vector<1x128xf32>
    %262 = vector.extract_strided_slice %151 {offsets = [12, 0], sizes = [1, 128], strides = [1, 1]} : vector<16x128xf32> to vector<1x128xf32>
    %cst_63 = arith.constant dense<0.000000e+00> : vector<8xf32>
    %263 = vector.multi_reduction <add>, %260, %cst_63 [1] : vector<8x128xf32> to vector<8xf32>
    %264 = vector.shape_cast %263 : vector<8xf32> to vector<8x1xf32>
    %cst_64 = arith.constant 3.125000e-02 : f32
    %265 = vector.broadcast %cst_64 : f32 to vector<8x1xf32>
    %266 = arith.mulf %264, %265 : vector<8x1xf32>
    %267 = vector.broadcast %266 : vector<8x1xf32> to vector<8x128xf32>
    %268 = arith.subf %260, %267 : vector<8x128xf32>
    %269 = vector.broadcast %6 : vector<1x128xf32> to vector<8x128xf32>
    %270 = arith.mulf %268, %269 : vector<8x128xf32>
    %271 = arith.mulf %270, %270 : vector<8x128xf32>
    %cst_65 = arith.constant dense<0.000000e+00> : vector<8xf32>
    %272 = vector.multi_reduction <add>, %271, %cst_65 [1] : vector<8x128xf32> to vector<8xf32>
    %273 = vector.shape_cast %272 : vector<8xf32> to vector<8x1xf32>
    %cst_66 = arith.constant 3.125000e-02 : f32
    %274 = vector.broadcast %cst_66 : f32 to vector<8x1xf32>
    %275 = arith.mulf %273, %274 : vector<8x1xf32>
    %cst_67 = arith.constant 9.99999974E-6 : f32
    %276 = vector.broadcast %cst_67 : f32 to vector<8x1xf32>
    %277 = arith.addf %275, %276 : vector<8x1xf32>
    %278 = math.rsqrt %277 : vector<8x1xf32>
    %279 = vector.broadcast %278 : vector<8x1xf32> to vector<8x128xf32>
    %280 = arith.mulf %270, %279 : vector<8x128xf32>
    %281 = vector.broadcast %261 : vector<1x128xf32> to vector<8x128xf32>
    %282 = arith.mulf %280, %281 : vector<8x128xf32>
    %283 = vector.broadcast %262 : vector<1x128xf32> to vector<8x128xf32>
    %284 = arith.addf %282, %283 : vector<8x128xf32>
    %c0_68 = arith.constant 0 : index
    %c0_69 = arith.constant 0 : index
    %c0_70 = arith.constant 0 : index
    %285 = vector.load %arg5[%c0_68, %c0_69, %c0_70] : memref<1x8x128xf32, #tpu.memory_space<vmem>>, vector<1x8x128xf32>
    %286 = vector.shape_cast %285 : vector<1x8x128xf32> to vector<8x128xf32>
    %287 = vector.shape_cast %284 : vector<8x128xf32> to vector<1x8x128xf32>
    tpu.vector_store %arg5[%c0_68, %c0_69, %c0_70], %287 {strides = array<i32>} : memref<1x8x128xf32, #tpu.memory_space<vmem>>, vector<1x8x128xf32>,
    return
  }
  func.func @transform_0(%arg0: i32) -> (i32, i32, i32) {
    %c0_i32 = arith.constant 0 : i32
    %c0_i32_0 = arith.constant 0 : i32
    %c0_i32_1 = arith.constant 0 : i32
    return %arg0, %c0_i32, %c0_i32_0 : i32, i32, i32
  }
  func.func @transform_1(%arg0: i32) -> (i32, i32, i32) {
    %c0_i32 = arith.constant 0 : i32
    %c0_i32_0 = arith.constant 0 : i32
    %c0_i32_1 = arith.constant 0 : i32
    %c0_i32_2 = arith.constant 0 : i32
    return %c0_i32, %c0_i32_0, %c0_i32_1 : i32, i32, i32
  }
  func.func @transform_2(%arg0: i32) -> (i32, i32, i32) {
    %c0_i32 = arith.constant 0 : i32
    %c0_i32_0 = arith.constant 0 : i32
    %c0_i32_1 = arith.constant 0 : i32
    %c0_i32_2 = arith.constant 0 : i32
    return %c0_i32, %c0_i32_0, %c0_i32_1 : i32, i32, i32
  }
  func.func @transform_3(%arg0: i32) -> (i32, i32, i32) {
    %c0_i32 = arith.constant 0 : i32
    %c0_i32_0 = arith.constant 0 : i32
    %c0_i32_1 = arith.constant 0 : i32
    %c0_i32_2 = arith.constant 0 : i32
    return %c0_i32, %c0_i32_0, %c0_i32_1 : i32, i32, i32
  }
  func.func @transform_4(%arg0: i32) -> (i32, i32, i32) {
    %c0_i32 = arith.constant 0 : i32
    %c0_i32_0 = arith.constant 0 : i32
    %c0_i32_1 = arith.constant 0 : i32
    return %arg0, %c0_i32, %c0_i32_0 : i32, i32, i32
  }
}

</mosaic_0001>

<bundles_post_ra>
// kernel: tpu_custom_call.1
= control target key start
LH: loop header
LB: loop body
LE: loop exit
PB: predicated region body
PF: predicated region fallthrough
CT: control target
= control target key end

     0   :  { %9 = vsyncpa [#allocation3], 0  ;;  %s3927_s0 = inlined_call_operand.hbm [shape: f32[2,8,128], index: 0, kind: input, shape index: {}]   ;;  %s3928_s1 = inlined_call_operand.hbm [shape: bf16[2,128,1024], index: 1, kind: input, shape index: {}]   ;;  %s3929_s2 = inlined_call_operand.hbm [shape: bf16[2,256,128], index: 2, kind: input, shape index: {}]   ;;  %s3930_s3 = inlined_call_operand.hbm [shape: f32[2,16,128], index: 3, kind: input, shape index: {}]   ;;  %s3931_s4 = inlined_call_operand.hbm [shape: f32[2,8,128], index: 4, kind: output, shape index: {}]  }
   0x1   :  { %11 = vsyncpa [#allocation3 + $0x1], 0 }
   0x2   :  { %12 = vsyncpa [#allocation6], 0 }
   0x3   :  { %13 = vsyncpa [#allocation9], 0 }
   0x4   :  { %14 = vsyncpa [#allocation4], 0 }
   0x5   :  { %16 = vsyncpa [#allocation4 + $0x1], 0  ;;  %s3421_s15 = smov 0   ;;  %s3423_s16 = smov 0  }
   0x6   :  { %s3425_s17 = smov 0   ;;  %s3427_s18 = smov 0  }
   0x7 LB: > { %s3442_s19 = sadd.s32 4294967295, %s3380_s18   ;;  %s2571_s20 = sadd.s32 4294967294, %s3380_s18   ;;  %s3380_s18 = sphi %s3427_s18, %s3954_s18   ;;  %s3376_s17 = sphi %s3425_s17, %s3953_s17   ;;  %s3372_s16 = sphi %s3423_s16, %s3952_s16   ;;  %s3368_s15 = sphi %s3421_s15, %s3951_s15  }
   0x8   : > { %p42_p0 = scmp.ne.s32.totalorder %s3372_s16, %s3368_s15  ;;  %p3932_p1 = scmp.eq.s32.totalorder %s3442_s19, 0 }
   0x9   : > { %p135_p3 = scmp.eq.s32.totalorder %s2571_s20, 1  ;;  %p2572_p5 = scmp.ge.s32.totalorder %s3380_s18, 1 }
   0xa   : > { %p3451_p4 = por %p3932_p1, %p42_p0  ;;  %p142_p7 = scmp.lt.s32.totalorder %s3380_s18, 3 }
   0xb   : > { %p3456_p6 = por %p135_p3, %p42_p0  ;;  %s3382_s24 = smov [#allocation5]  }
   0xc   : > { %s3935_s21 = scalar_select %p3451_p4, 1, 0 }
   0xd   : > { %s3936_s22 = scalar_select %p3456_p6, 1, 0 }
   0xe   : > { %p3461_p8 = pnand %p2572_p5, %p142_p7  ;;  %s154_s25 = sshll.u32 %s3382_s24, 4  ;;  %s3465_s25 = int_to_ptr.vmem [resolvable:$true] %s154_s25 }
   0xf   : > { %s3383_s27 = smov [#allocation7]   ;;  %s3192_s5 = scalar_lea.hbm %s3928_s1, 16384 }
  0x10   : > { %s3937_s23 = scalar_select %p3461_p8, 1, 0 }
  0x11   : > { %p3066_p9 = pneg %p3461_p8  ;;  %s167_s28 = sshll.u32 %s3383_s27, 4  ;;  %s3476_s28 = int_to_ptr.vmem [resolvable:$true] %s167_s28 }
  0x12   : > { %p3193_p12 = scmp.ne.s32.totalorder %s3928_s1, %s3192_s5  ;;  %p3199_p5 = scmp.lt.u32.totalorder %s3192_s5, %s3928_s1 }
  0x13   : > { %p3472_p11 = pnand %p3066_p9, %p3932_p1 }
  0x15   : > { %p3486_p13 = pneg %p3472_p11 }
  0x17   : > { %p3195_p0 = pnand %p3486_p13, %p3193_p12 }
  0x19   : > { %p3196_p3 = pneg %p3195_p0 }
  0x1b   : > { %p3201_p7 = pnand %p3199_p5, %p3196_p3 }
  0x1d   : > { %3204 = shalt.err (!%p3201_p7)
}
  0x1e   : > { %s3205_s11 = scalar_lea.vmem %s3465_s25, 16384  ;;  %p3213_p2 = scmp.lt.s32.totalorder %s3465_s25, %s3465_s25 }
  0x1f   : > { %p3206_p9 = scmp.ne.s32.totalorder %s3465_s25, %s3205_s11  ;;  %p3214_p6 = scmp.lt.s32.totalorder %s3205_s11, %s3205_s11 }
  0x21   : > { %p3208_p10 = pnand %p3206_p9, %p3486_p13  ;;  %p3215_p12 = por %p3214_p6, %p3213_p2 }
  0x23   : > { %p3209_p1 = pneg %p3208_p10 }
  0x25   : > { %p3216_p0 = pnand %p3215_p12, %p3209_p1 }
  0x27   : > { %3219 = shalt.err (!%p3216_p0)
}
  0x28   : > { %s3384_s12 = smov 512   ;;  %s3385_s13 = smov 32  }
  0x29   : > { %3069 = dma.hbm_to_vmem [thread:$0]  (!%p3472_p11), %s3928_s1, 16384, %s3465_s25, [#allocation6], %s3384_s12, %s3384_s12, %s3385_s13  }
  0x2a   : > { %s3220_s29 = scalar_lea.hbm %s3929_s2, 4096 }
  0x2b   : > { %p3221_p2 = scmp.ne.s32.totalorder %s3929_s2, %s3220_s29  ;;  %p3227_p10 = scmp.lt.u32.totalorder %s3220_s29, %s3929_s2 }
  0x2d   : > { %p3223_p1 = pnand %p3221_p2, %p3486_p13 }
  0x2f   : > { %p3224_p6 = pneg %p3223_p1 }
  0x31   : > { %p3229_p3 = pnand %p3227_p10, %p3224_p6 }
  0x33   : > { %3232 = shalt.err (!%p3229_p3)
}
  0x34   : > { %s3233_s25 = scalar_lea.vmem %s3476_s28, 4096  ;;  %p3241_p12 = scmp.lt.s32.totalorder %s3476_s28, %s3476_s28 }
  0x35   : > { %p3234_p5 = scmp.ne.s32.totalorder %s3476_s28, %s3233_s25  ;;  %p3242_p0 = scmp.lt.s32.totalorder %s3233_s25, %s3233_s25 }
  0x37   : > { %p3236_p7 = pnand %p3234_p5, %p3486_p13  ;;  %p3243_p2 = por %p3242_p0, %p3241_p12 }
  0x39   : > { %p3237_p9 = pneg %p3236_p7 }
  0x3b   : > { %p3244_p1 = pnand %p3243_p2, %p3237_p9 }
  0x3d   : > { %3247 = shalt.err (!%p3244_p1)
}
  0x3e   : > { %s3386_s9 = smov 64   ;;  %s3387_s10 = smov 4  }
  0x3f   : > { %3072 = dma.hbm_to_vmem [thread:$0]  (!%p3472_p11), %s3929_s2, 4096, %s3476_s28, [#allocation6], %s3386_s9, %s3386_s9, %s3387_s10  }
  0x40   : > { %s3388_s13 = smov [#allocation8]   ;;  %s3248_s27 = scalar_lea.hbm %s3930_s3, 512 }
  0x41   : > { %s180_s14 = sshll.u32 %s3388_s13, 4  ;;  %p3249_p6 = scmp.ne.s32.totalorder %s3930_s3, %s3248_s27  ;;  %s181_s14 = int_to_ptr.vmem [resolvable:$true] %s180_s14 }
  0x42   : > { %p3255_p5 = scmp.lt.u32.totalorder %s3248_s27, %s3930_s3 }
  0x43   : > { %p3251_p10 = pnand %p3249_p6, %p3486_p13 }
  0x45   : > { %p3252_p3 = pneg %p3251_p10 }
  0x47   : > { %p3257_p7 = pnand %p3255_p5, %p3252_p3 }
  0x49   : > { %3260 = shalt.err (!%p3257_p7)
}
  0x4a   : > { %s3261_s28 = scalar_lea.vmem %s181_s14, 512  ;;  %p3269_p2 = scmp.lt.s32.totalorder %s181_s14, %s181_s14 }
  0x4b   : > { %p3262_p9 = scmp.ne.s32.totalorder %s181_s14, %s3261_s28  ;;  %p3270_p1 = scmp.lt.s32.totalorder %s3261_s28, %s3261_s28 }
  0x4d   : > { %p3264_p12 = pnand %p3262_p9, %p3486_p13  ;;  %p3271_p4 = por %p3270_p1, %p3269_p2 }
  0x4f   : > { %p3265_p0 = pneg %p3264_p12 }
  0x51   : > { %p3272_p8 = pnand %p3271_p4, %p3265_p0 }
  0x53   : > { %3275 = shalt.err (!%p3272_p8)
}
  0x54   : > { %s3389_s7 = smov 128   ;;  %s3390_s8 = smov 8  }
  0x55   : > { %3075 = dma.hbm_to_vmem [thread:$0]  (!%p3472_p11), %s3930_s3, 512, %s181_s14, [#allocation9], %s3389_s7, %s3389_s7, %s3390_s8  }
  0x56   : > { %s3549_s10 = sadd.s32 1, %s3380_s18   ;;  %s29_s12 = sadd.s32 1, %s3376_s17 }
  0x57   : > { %s26_s11 = ssub.s32 %s3380_s18, %s3549_s10  ;;  %p36_p8 = scmp.ne.s32.totalorder %s3376_s17, %s3372_s16 }
  0x58   : > { %p27_p4 = scmp.eq.s32.totalorder %s26_s11, 0  ;;  %p37_p13 = scmp.eq.s32.totalorder %s3380_s18, 0 }
  0x59   : > { %p3087_p6 = scmp.lt.s32.totalorder %s3380_s18, 2  ;;  %p3940_p3 = scmp.eq.s32.totalorder %s3442_s19, 1 }
  0x5a   : > { %s3559_s13 = scalar_select %p27_p4, %s3376_s17, %s29_s12  }
  0x5b   : > { %p38_p10 = por %p37_p13, %p36_p8  ;;  %p3563_p5 = por %p3940_p3, %p36_p8 }
  0x5c   : > { %s194_s26 = sand.u32 1, %s3376_s17   ;;  %s2578_s24 = sshll.u32 %s3380_s18, 7 }
  0x5d   : > { %s2577_s14 = sshll.u32 %s194_s26, 3  ;;  %s3572_s30 = scalar_lea.hbm %s3927_s0, %s2578_s24 }
  0x5e   : > { %s198_s5 = scalar_lea.vmem [#allocation2], %s2577_s14  ;;  %p3574_p11 = pnand %p3087_p6, %p38_p10 }
  0x5f   : > { %s205_s6 = sshll.u32 %s198_s5, 4  ;;  %s195_s7 = scalar_lea.sflag [#allocation3], %s194_s26  ;;  %s3578_s6 = int_to_ptr.vmem [resolvable:$true] %s205_s6 }
  0x60   : > { %s3276_s8 = scalar_lea.hbm %s3572_s30, 128  ;;  %p3278_p9 = pneg %p3574_p11 }
  0x61   : > { %p3277_p7 = scmp.ne.s32.totalorder %s3572_s30, %s3276_s8  ;;  %s3281_s11 = scalar_lea.hbm %s3927_s0, 256 }
  0x62   : > { %p3282_p2 = scmp.lt.u32.totalorder %s3572_s30, %s3927_s0  ;;  %p3283_p1 = scmp.lt.u32.totalorder %s3281_s11, %s3276_s8 }
  0x63   : > { %p3279_p12 = pnand %p3278_p9, %p3277_p7  ;;  %p3285_p8 = scmp.lt.u32.totalorder %s3276_s8, %s3572_s30 }
  0x64   : > { %p3284_p4 = por %p3283_p1, %p3282_p2 }
  0x65   : > { %p3280_p0 = pneg %p3279_p12 }
  0x66   : > { %p3286_p13 = por %p3285_p8, %p3284_p4 }
  0x68   : > { %p3287_p6 = pnand %p3286_p13, %p3280_p0 }
  0x6a   : > { %3290 = shalt.err (!%p3287_p6)
}
  0x6b   : > { %s3291_s26 = scalar_lea.vmem %s3578_s6, 128  ;;  %s3391_s14 = smov [#allocation2]  }
  0x6c   : > { %p3292_p10 = scmp.ne.s32.totalorder %s3578_s6, %s3291_s26  ;;  %s3296_s27 = sshll.u32 %s3391_s14, 4  ;;  %s3297_s27 = int_to_ptr.vmem [resolvable:$false] %s3296_s27 }
  0x6d   : > { %s3298_s29 = scalar_lea.vmem %s3297_s27, 256  ;;  %p3299_p12 = scmp.lt.s32.totalorder %s3578_s6, %s3297_s27 }
  0x6e   : > { %p3294_p3 = pnand %p3292_p10, %p3278_p9  ;;  %p3300_p2 = scmp.lt.s32.totalorder %s3298_s29, %s3291_s26 }
  0x70   : > { %p3295_p7 = pneg %p3294_p3  ;;  %p3301_p1 = por %p3300_p2, %p3299_p12 }
  0x72   : > { %p3302_p4 = pnand %p3301_p1, %p3295_p7 }
  0x74   : > { %3305 = shalt.err (!%p3302_p4)
}
  0x75   : > { %3079 = dma.hbm_to_vmem [thread:$0]  (!%p3574_p11), %s3572_s30, 128, %s3578_s6, %s195_s7  }
  0x76   : > { %p3943_p0 = scmp.ne.s32.totalorder %s3937_s23, 0 }
  0x77   : > { %s3608_s5 = sand.u32 (!%p3943_p0), 1, %s3372_s16   ;;  %p3944_p9 = scmp.ne.s32.totalorder (!%p3943_p0), %s3935_s21, 0 }
  0x78   : > { %214 = sbr.rel (%p3943_p0) target bundleno = 5749 (0x1675), region = 36  ;;  %s2580_s8 = sshll.u32 (!%p3943_p0), %s3608_s5, 3 }
  0x79   : > { %s217_s25 = scalar_lea.sflag (!%p3943_p0), [#allocation3], %s3608_s5  ;;  %s3614_s9 = scalar_lea.vmem (!%p3943_p0), [#allocation2], %s2580_s8 }
  0x7f   : > { %3351 = dma.done.wait (%p3944_p9), %s217_s25, 128  }
  0x80   : > { %3353 = vsyncadd (%p3944_p9), %s217_s25, 4294967168  ;;  %p3945_p11 = scmp.eq.s32.totalorder %s3442_s19, 0 }
  0x82   : > { %3355 = dma.done.wait (%p3945_p11), [#allocation6], 20480   ;;  %p3946_p8 = pmov %p3945_p11 }
  0x84   : > { %3357 = vsyncadd (%p3946_p8), [#allocation6], 4294946816  ;;  %p3947_p13 = pmov %p3946_p8 }
  0x85   : > { %p3948_p6 = pmov %p3946_p8 }
  0x86   : > { %3359 = dma.done.wait (%p3947_p13), [#allocation9], 512  }
  0x87   : > { %3361 = vsyncadd (%p3948_p6), [#allocation9], 4294966784  ;;  %v3392_v0 = vmov 0   ;;  %v265_v1 = vld [vmem:[#allocation5 + $0x8] sm:$0xff]  ;;  %v264_v3 = vld [vmem:[#allocation5] sm:$0xff]  ;;  %vm3394_vm0 = vmmov 0  }
  0x88   : > { %676 = vmatprep.mubr.bf16.mxu1 %v3392_v0  ;;  %635 = vmatprep.mubr.bf16.mxu0 %v3392_v0  ;;  %v269_v2 = vld [vmem:[#allocation5 + $0x28] sm:$0xff]  ;;  %v268_v6 = vld [vmem:[#allocation5 + $0x20] sm:$0xff]  ;;  %v3631_v63 = vld [vmem:[%s3614_s9] sm:$0xff]  ;;  %vm783_vm1 = vcmask 64512   ;;  %vm800_vm2 = vcmask 1043456   ;;  %s2751_s21 = sshll.u32 %s3442_s19, 7 }
  0x89   : > { %v2589_v4 = vcombine.high %v265_v1, %v269_v2  ;;  %v2588_v5 = vcombine.low %v265_v1, %v269_v2  ;;  %v273_v7 = vld [vmem:[#allocation5 + $0x48] sm:$0xff]  ;;  %v2587_v9 = vcombine.high %v264_v3, %v268_v6  ;;  %v2586_v11 = vcombine.low %v264_v3, %v268_v6  ;;  %v272_v12 = vld [vmem:[#allocation5 + $0x40] sm:$0xff]  ;;  %s256_s23 = scalar_lea.vmem [#allocation10], %s2580_s8  ;;  %s3883_s7 = scalar_lea.hbm %s3931_s4, %s2751_s21 }
  0x8a   : > { %v277_v8 = vld [vmem:[#allocation5 + $0x68] sm:$0xff]  ;;  %v276_v13 = vld [vmem:[#allocation5 + $0x60] sm:$0xff]  ;;  %v3635_v3 = vpack.c.bf16 %v3631_v63, %v3631_v63  ;;  %s2472_s30 = sshll.u32 %s256_s23, 4  ;;  %s2459_s11 = scalar_lea.sflag [#allocation4], %s3608_s5  ;;  %s3885_s30 = int_to_ptr.vmem [resolvable:$true] %s2472_s30 }
  0x8b   : > { %v2595_v10 = vcombine.high %v273_v7, %v277_v8  ;;  %v281_v14 = vld [vmem:[#allocation5 + $0x88] sm:$0xff]  ;;  %644 = vmatprep.subr.bf16.mxu1 %v2589_v4  ;;  %v2593_v15 = vcombine.high %v272_v12, %v276_v13  ;;  %v280_v17 = vld [vmem:[#allocation5 + $0x80] sm:$0xff]  ;;  %603 = vmatprep.subr.bf16.mxu0 %v2587_v9  ;;  %v2594_v19 = vcombine.low %v273_v7, %v277_v8  ;;  %v3393_v4 = vmov 0.0   ;;  %s3306_s12 = scalar_lea.vmem %s3885_s30, 128  ;;  %s3395_s19 = smov [#allocation10]  }
  0x8c   : > { %v285_v16 = vld [vmem:[#allocation5 + $0xa8] sm:$0xff]  ;;  %v284_v18 = vld [vmem:[#allocation5 + $0xa0] sm:$0xff]  ;;  %645 = vmatpush1.bf16.msra.mxu1 %v2588_v5  ;;  %604 = vmatpush1.bf16.msra.mxu0 %v2586_v11  ;;  %v2592_v21 = vcombine.low %v272_v12, %v276_v13  ;;  %v259_v5 = vlaneseq  ;;  %p3307_p10 = scmp.ne.s32.totalorder %s3885_s30, %s3306_s12  ;;  %s3310_s24 = sshll.u32 %s3395_s19, 4  ;;  %s3311_s24 = int_to_ptr.vmem [resolvable:$false] %s3310_s24 }
  0x8d   : > { %646 = vmatprep.subr.bf16.mxu1 %v2595_v10  ;;  %v2601_v20 = vcombine.high %v281_v14, %v285_v16  ;;  %605 = vmatprep.subr.bf16.mxu0 %v2593_v15  ;;  %v2599_v22 = vcombine.high %v280_v17, %v284_v18  ;;  %v289_v23 = vld [vmem:[#allocation5 + $0xc8] sm:$0xff]  ;;  %v288_v25 = vld [vmem:[#allocation5 + $0xc0] sm:$0xff]  ;;  %v2600_v27 = vcombine.low %v281_v14, %v285_v16  ;;  %s3312_s26 = scalar_lea.vmem %s3311_s24, 256  ;;  %p3313_p12 = scmp.lt.s32.totalorder %s3885_s30, %s3311_s24 }
  0x8e   : > { %v293_v24 = vld [vmem:[#allocation5 + $0xe8] sm:$0xff]  ;;  %v292_v26 = vld [vmem:[#allocation5 + $0xe0] sm:$0xff]  ;;  %v2598_v29 = vcombine.low %v280_v17, %v284_v18  ;;  %v3644_v6 = vshrl.u32 %v259_v5, 7  ;;  %p3308_p3 = pnand %p3307_p10, %p3563_p5  ;;  %p3314_p2 = scmp.lt.s32.totalorder %s3312_s26, %s3306_s12 }
  0x8f   : > { %v2607_v28 = vcombine.high %v289_v23, %v293_v24  ;;  %v2605_v30 = vcombine.high %v288_v25, %v292_v26  ;;  %v297_v31 = vld [vmem:[#allocation5 + $0x108] sm:$0xff]  ;;  %v296_v33 = vld [vmem:[#allocation5 + $0x100] sm:$0xff]  ;;  %v2606_v35 = vcombine.low %v289_v23, %v293_v24  ;;  %v2604_v39 = vcombine.low %v288_v25, %v292_v26  ;;  %v266_v24 = vld [vmem:[#allocation5 + $0x10] sm:$0xff] }
  0x90   : > { %647 = vmatpush1.bf16.msra.mxu1 %v2594_v19  ;;  %606 = vmatpush1.bf16.msra.mxu0 %v2592_v21  ;;  %v301_v32 = vld [vmem:[#allocation5 + $0x128] sm:$0xff]  ;;  %v300_v34 = vld [vmem:[#allocation5 + $0x120] sm:$0xff]  ;;  %v3647_v7 = vsub.s32 2, %v3644_v6  ;;  %v3652_v9 = vsub.s32 0, %v3644_v6  ;;  %v270_v25 = vld [vmem:[#allocation5 + $0x30] sm:$0xff]  ;;  %p3309_p7 = pneg %p3308_p3  ;;  %p3315_p1 = por %p3314_p2, %p3313_p12 }
  0x91   : > { %648 = vmatprep.subr.bf16.mxu1 %v2601_v20  ;;  %607 = vmatprep.subr.bf16.mxu0 %v2599_v22  ;;  %v305_v36 = vld [vmem:[#allocation5 + $0x148] sm:$0xff]  ;;  %v2613_v38 = vcombine.high %v297_v31, %v301_v32  ;;  %v304_v40 = vld [vmem:[#allocation5 + $0x140] sm:$0xff]  ;;  %v2611_v42 = vcombine.high %v296_v33, %v300_v34  ;;  %v2612_v43 = vcombine.low %v297_v31, %v301_v32  ;;  %v274_v26 = vld [vmem:[#allocation5 + $0x50] sm:$0xff] }
  0x92   : > { %v309_v37 = vld [vmem:[#allocation5 + $0x168] sm:$0xff]  ;;  %v308_v41 = vld [vmem:[#allocation5 + $0x160] sm:$0xff]  ;;  %v2610_v47 = vcombine.low %v296_v33, %v300_v34  ;;  %v282_v31 = vld [vmem:[#allocation5 + $0x90] sm:$0xff]  ;;  %p3316_p4 = pnand %p3315_p1, %p3309_p7 }
  0x93   : > { %v313_v44 = vld [vmem:[#allocation5 + $0x188] sm:$0xff]  ;;  %v2619_v46 = vcombine.high %v305_v36, %v309_v37  ;;  %v312_v48 = vld [vmem:[#allocation5 + $0x180] sm:$0xff]  ;;  %v2617_v50 = vcombine.high %v304_v40, %v308_v41  ;;  %v2618_v51 = vcombine.low %v305_v36, %v309_v37  ;;  %v2616_v55 = vcombine.low %v304_v40, %v308_v41  ;;  %v286_v32 = vld [vmem:[#allocation5 + $0xb0] sm:$0xff] }
  0x94   : > { %649 = vmatpush1.bf16.msra.mxu1 %v2600_v27  ;;  %608 = vmatpush1.bf16.msra.mxu0 %v2598_v29  ;;  %v317_v45 = vld [vmem:[#allocation5 + $0x1a8] sm:$0xff]  ;;  %v316_v49 = vld [vmem:[#allocation5 + $0x1a0] sm:$0xff]  ;;  %v2590_v27 = vcombine.low %v266_v24, %v270_v25  ;;  %v278_v29 = vld [vmem:[#allocation5 + $0x70] sm:$0xff]  ;;  %v2603_v34 = vcombine.high %v282_v31, %v286_v32  ;;  %v2602_v37 = vcombine.low %v282_v31, %v286_v32 }
  0x95   : > { %650 = vmatprep.subr.bf16.mxu1 %v2607_v28  ;;  %609 = vmatprep.subr.bf16.mxu0 %v2605_v30  ;;  %v321_v52 = vld [vmem:[#allocation5 + $0x1c8] sm:$0xff]  ;;  %v2625_v54 = vcombine.high %v313_v44, %v317_v45  ;;  %v320_v56 = vld [vmem:[#allocation5 + $0x1c0] sm:$0xff]  ;;  %v2623_v58 = vcombine.high %v312_v48, %v316_v49  ;;  %v2624_v59 = vcombine.low %v313_v44, %v317_v45  ;;  %v294_v36 = vld [vmem:[#allocation5 + $0xf0] sm:$0xff] }
  0x96   : > { %v325_v53 = vld [vmem:[#allocation5 + $0x1e8] sm:$0xff]  ;;  %v324_v57 = vld [vmem:[#allocation5 + $0x1e0] sm:$0xff]  ;;  %v2622_v61 = vcombine.low %v312_v48, %v316_v49  ;;  %v2591_v28 = vcombine.high %v266_v24, %v270_v25  ;;  %v2597_v30 = vcombine.high %v274_v26, %v278_v29  ;;  %v2596_v33 = vcombine.low %v274_v26, %v278_v29  ;;  %v302_v40 = vld [vmem:[#allocation5 + $0x130] sm:$0xff] }
  0x97   : > { %v2631_v60 = vcombine.high %v321_v52, %v325_v53  ;;  %v2629_v62 = vcombine.high %v320_v56, %v324_v57  ;;  %v2630_v1 = vcombine.low %v321_v52, %v325_v53  ;;  %v2628_v2 = vcombine.low %v320_v56, %v324_v57  ;;  %v3649_v8 = vld [vmem:[#allocation8] sm:$0xff]  ;;  %v310_v44 = vld [vmem:[#allocation5 + $0x170] sm:$0xff] }
  0x98   : > { %651 = vmatpush1.bf16.msra.mxu1 %v2606_v35  ;;  %610 = vmatpush1.bf16.msra.mxu0 %v2604_v39  ;;  %v734_v10 = vrot.slane %v3649_v8, %v3647_v7  ;;  %v729_v12 = vrot.slane %v3649_v8, %v3652_v9  ;;  %v290_v35 = vld [vmem:[#allocation5 + $0xd0] sm:$0xff]  ;;  %v857_v24 = vsub.s32 5, %v3644_v6  ;;  %v3685_v25 = vsub.s32 1, %v3644_v6 }
  0x99   : > { %652 = vmatprep.subr.bf16.mxu1 %v2613_v38  ;;  %611 = vmatprep.subr.bf16.mxu0 %v2611_v42  ;;  %v2609_v38 = vcombine.high %v290_v35, %v294_v36  ;;  %v298_v39 = vld [vmem:[#allocation5 + $0x110] sm:$0xff]  ;;  %v2608_v41 = vcombine.low %v290_v35, %v294_v36 }
  0x9a   : > { %v2615_v42 = vcombine.high %v298_v39, %v302_v40  ;;  %v2614_v45 = vcombine.low %v298_v39, %v302_v40  ;;  %v318_v48 = vld [vmem:[#allocation5 + $0x1b0] sm:$0xff]  ;;  %v858_v29 = vrot.slane %v3649_v8, %v857_v24 }
  0x9b   : > { %v326_v52 = vld [vmem:[#allocation5 + $0x1f0] sm:$0xff] }
  0x9c   : > { %653 = vmatpush1.bf16.msra.mxu1 %v2612_v43  ;;  %612 = vmatpush1.bf16.msra.mxu0 %v2610_v47  ;;  %v306_v43 = vld [vmem:[#allocation5 + $0x150] sm:$0xff] }
  0x9d   : > { %654 = vmatprep.subr.bf16.mxu1 %v2619_v46  ;;  %613 = vmatprep.subr.bf16.mxu0 %v2617_v50  ;;  %v2621_v46 = vcombine.high %v306_v43, %v310_v44  ;;  %v314_v47 = vld [vmem:[#allocation5 + $0x190] sm:$0xff]  ;;  %v2620_v49 = vcombine.low %v306_v43, %v310_v44 }
  0x9e   : > { %v2627_v50 = vcombine.high %v314_v47, %v318_v48  ;;  %v2626_v53 = vcombine.low %v314_v47, %v318_v48 }
  0xa0   : > { %655 = vmatpush1.bf16.msra.mxu1 %v2618_v51  ;;  %614 = vmatpush1.bf16.msra.mxu0 %v2616_v55  ;;  %v322_v51 = vld [vmem:[#allocation5 + $0x1d0] sm:$0xff] }
  0xa1   : > { %656 = vmatprep.subr.bf16.mxu1 %v2625_v54  ;;  %615 = vmatprep.subr.bf16.mxu0 %v2623_v58  ;;  %v2633_v54 = vcombine.high %v322_v51, %v326_v52  ;;  %v2632_v55 = vcombine.low %v322_v51, %v326_v52  ;;  %v3145_v51 = vld [vmem:[#allocation7 + $0x48] sm:$0xff]   ;;  %v3146_v52 = vld [vmem:[#allocation7 + $0x50] sm:$0xff]  }
  0xa4   : > { %657 = vmatpush1.bf16.msra.mxu1 %v2624_v59  ;;  %616 = vmatpush1.bf16.msra.mxu0 %v2622_v61  ;;  %v3671_v61 = vsub.s32 4, %v3644_v6 }
  0xa5   : > { %658 = vmatprep.subr.bf16.mxu1 %v2631_v60  ;;  %617 = vmatprep.subr.bf16.mxu0 %v2629_v62 }
  0xa6   : > { %v739_v62 = vrot.slane %v3649_v8, %v3671_v61 }
  0xa8   : > { %659 = vmatpush1.bf16.msra.mxu1 %v2630_v1  ;;  %618 = vmatpush1.bf16.msra.mxu0 %v2628_v2 }
  0xa9   : > { %2842 = vmatprep.subr.bf16.mxu1 %v3393_v4  ;;  %685 = vmatprep.subr.bf16.mxu0 %v2591_v28 }
  0xab   : > { %677 = vmatmul.mubr.bf16.vlgmr.msra.gmra.mrb[0].mxu1 %v3635_v3  ;;  %636 = vmatmul.mubr.bf16.vlgmr.msra.gmra.mrb[0].mxu0 %v3635_v3 }
  0xac   : > { %717 = vmatprep.mubr.bf16.mxu0 %v3392_v0  ;;  %2844 = vmatprep.mubr.msk.bf16.mxu1 %vm3394_vm0, %v3393_v4 }
  0xad   : > { %686 = vmatpush1.bf16.msra.mxu0 %v2590_v27 }
  0xae   : > { %687 = vmatprep.subr.bf16.mxu0 %v2597_v30  ;;  %v848_v30 = vrot.slane %v3649_v8, %v3685_v25 }
  0xb1   : > { %688 = vmatpush1.bf16.msra.mxu0 %v2596_v33 }
  0xb2   : > { %689 = vmatprep.subr.bf16.mxu0 %v2603_v34 }
  0xb5   : > { %690 = vmatpush1.bf16.msra.mxu0 %v2602_v37 }
  0xb6   : > { %691 = vmatprep.subr.bf16.mxu0 %v2609_v38 }
  0xb9   : > { %692 = vmatpush1.bf16.msra.mxu0 %v2608_v41 }
  0xba   : > { %693 = vmatprep.subr.bf16.mxu0 %v2615_v42 }
  0xbd   : > { %694 = vmatpush1.bf16.msra.mxu0 %v2614_v45 }
  0xbe   : > { %695 = vmatprep.subr.bf16.mxu0 %v2621_v46 }
  0xc1   : > { %696 = vmatpush1.bf16.msra.mxu0 %v2620_v49 }
  0xc2   : > { %697 = vmatprep.subr.bf16.mxu0 %v2627_v50  ;;  %v3144_v50 = vld [vmem:[#allocation7 + $0x40] sm:$0xff]  }
  0xc5   : > { %698 = vmatpush1.bf16.msra.mxu0 %v2626_v53  ;;  %v3147_v53 = vld [vmem:[#allocation7 + $0x58] sm:$0xff]  }
  0xc6   : > { %699 = vmatprep.subr.bf16.mxu0 %v2633_v54  ;;  %v3148_v54 = vld [vmem:[#allocation7 + $0x60] sm:$0xff]  }
  0xc9   : > { %700 = vmatpush1.bf16.msra.mxu0 %v2632_v55  ;;  %v3149_v55 = vld [vmem:[#allocation7 + $0x68] sm:$0xff]  }
  0xca   : > { %2866 = vmatprep.subr.bf16.mxu0 %v3393_v4 }
  0xcc   : > { %718 = vmatmul.mubr.bf16.vlgmr.msra.gmra.mrb[4].mxu0 %v3635_v3 }
  0xcd   : > { %2882 = vmatprep.mubr.msk.bf16.mxu0 %vm3394_vm0, %v3393_v4  ;;  %2867 = vmatpush3.bf16.msra.mxu0 %v3144_v50  ;;  %v287_v50 = vld [vmem:[#allocation5 + $0xb8] sm:$0xff] }
  0xce   : > { %2868 = vmatprep.subr.bf16.mxu0 %v3393_v4 }
  0xd1   : > { %2869 = vmatpush3.bf16.msra.mxu0 %v3145_v51 }
  0xd2   : > { %2870 = vmatprep.subr.bf16.mxu0 %v3393_v4 }
  0xd5   : > { %2871 = vmatpush3.bf16.msra.mxu0 %v3146_v52  ;;  %v291_v52 = vld [vmem:[#allocation5 + $0xd8] sm:$0xff] }
  0xd6   : > { %2872 = vmatprep.subr.bf16.mxu0 %v3393_v4 }
  0xd9   : > { %2873 = vmatpush3.bf16.msra.mxu0 %v3147_v53  ;;  %v295_v53 = vld [vmem:[#allocation5 + $0xf8] sm:$0xff] }
  0xda   : > { %2874 = vmatprep.subr.bf16.mxu0 %v3393_v4 }
  0xdd   : > { %2875 = vmatpush3.bf16.msra.mxu0 %v3148_v54  ;;  %v299_v54 = vld [vmem:[#allocation5 + $0x118] sm:$0xff] }
  0xde   : > { %2876 = vmatprep.subr.bf16.mxu0 %v3393_v4 }
  0xe1   : > { %2877 = vmatpush3.bf16.msra.mxu0 %v3149_v55  ;;  %v303_v55 = vld [vmem:[#allocation5 + $0x138] sm:$0xff] }
  0xe2   : > { %2878 = vmatprep.subr.bf16.mxu0 %v3393_v4 }
 0x17e   : > { %v678_v11 = vpop.f32.mrb[0].mxu1  ;;  %v637_v15 = vpop.f32.mrb[0].mxu0 }
 0x17f   : > { %v735_v13 = vadd.f32 %v734_v10, %v678_v11  ;;  %v3658_v14 = vpop.f32.mrb[1].mxu1  ;;  %v3660_v17 = vpop.f32.mrb[1].mxu0  ;;  %v730_v21 = vadd.f32 %v729_v12, %v637_v15 }
 0x180   : > { %v682_v16 = vpop.f32.mrb[2].mxu1  ;;  %v641_v20 = vpop.f32.mrb[2].mxu0  ;;  %v849_v34 = vadd.f32 %v848_v30, %v3660_v17  ;;  %v1140_v30 = vsub.s32 6, %v3644_v6 }
 0x181   : > { %v742_v18 = vpack.c.bf16 %v735_v13, %v735_v13  ;;  %v683_v19 = vpop.f32.mrb[3].mxu1  ;;  %v642_v22 = vpop.f32.mrb[3].mxu0  ;;  %v741_v23 = vpack.c.bf16 %v730_v21, %v730_v21 }
 0x182   : > { %v3679_v22 = vsub.s32 3, %v3644_v6  ;;  %v860_v35 = vpack.c.bf16 %v849_v34, %v849_v34 }
 0x183   : > { %2843 = vmatpush3.bf16.xpose.msra.mxu1 %v742_v18 }
 0x184   : > { %2848 = vmatprep.subr.bf16.mxu1 %v3393_v4 }
 0x18a   : > { %2845 = vmatmul.mubr.bf16.vlgmr.msra.gmra.mrb[4].mxu1 %v741_v23  ;;  %v853_v23 = vrot.slane %v3649_v8, %v3679_v22 }
 0x18b   : > { %2850 = vmatprep.mubr.msk.bf16.mxu1 %vm3394_vm0, %v3393_v4 }
 0x18c   : > { %v854_v27 = vadd.f32 %v853_v23, %v3658_v14 }
 0x18e   : > { %v861_v32 = vpack.c.bf16 %v854_v27, %v854_v27 }
 0x19f   : > { %v719_v1 = vpop.f32.mrb[4].mxu0 }
 0x1a0   : > { %v740_v2 = vadd.f32 %v739_v62, %v719_v1  ;;  %v721_v18 = vpop.f32.mrb[5].mxu0  ;;  %v3137_v1 = vld [vmem:[#allocation7 + $0x8] sm:$0xff]  }
 0x1a1   : > { %v723_v19 = vpop.f32.mrb[6].mxu0  ;;  %v859_v33 = vadd.f32 %v858_v29, %v721_v18 }
 0x1a2   : > { %v796_v3 = vpack.c.bf16 %v740_v2, %v740_v2  ;;  %v724_v20 = vpop.f32.mrb[7].mxu0  ;;  %v3138_v2 = vld [vmem:[#allocation7 + $0x10] sm:$0xff]  }
 0x1a3   : > { %v914_v14 = vpack.c.bf16 %v859_v33, %v859_v33 }
 0x1a4   : > { %v802_v10 = vsel %vm800_vm2, %v796_v3, 0  ;;  %v3139_v3 = vld [vmem:[#allocation7 + $0x18] sm:$0xff]  }
 0x1a5   : > { %2849 = vmatpush3.bf16.msra.mxu1 %v802_v10  ;;  %v919_v36 = vsel %vm800_vm2, %v914_v14, 0  ;;  %v3140_v10 = vld [vmem:[#allocation7 + $0x20] sm:$0xff]  }
 0x1a6   : > { %2854 = vmatprep.subr.bf16.mxu1 %v3393_v4 }
 0x25d   : > { %v777_v56 = vpop.f32.mrb[4].mxu1 }
 0x25e   : > { %v2846_v57 = vpop.f32.mrb[5].mxu1  ;;  %v784_v58 = vsel %vm783_vm1, %v777_v56, -inf }
 0x25f   : > { %785 = vmax.xlane.f32.xlu0 %v784_v58  ;;  %v780_v59 = vpop.f32.mrb[6].mxu1 }
 0x260   : > { %v2847_v60 = vpop.f32.mrb[7].mxu1 }
 0x261   : > { %v3136_v60 = vld [vmem:[#allocation7] sm:$0xff]  }
 0x2ec   : > { %v786_v11 = vpop.xlane.xlu0 %785 }
 0x2ed   : > { %v787_v12 = vsub.f32 %v777_v56, %v786_v11  ;;  %v3150_v56 = vld [vmem:[#allocation7 + $0x70] sm:$0xff]   ;;  %v3141_v11 = vld [vmem:[#allocation7 + $0x28] sm:$0xff]  }
 0x2ee   : > { %2879 = vmatpush3.bf16.msra.mxu0 %v3150_v56  ;;  %v2656_v56 = vcombine.low %v299_v54, %v303_v55 }
 0x2ef   : > { %v788_v13 = vmul.f32 1.442695, %v787_v12  ;;  %2880 = vmatprep.subr.bf16.mxu0 %v3393_v4  ;;  %v3142_v12 = vld [vmem:[#allocation7 + $0x30] sm:$0xff]  }
 0x2f1   : > { %3168 = vpow2.f32 %v788_v13  ;;  %v3143_v13 = vld [vmem:[#allocation7 + $0x38] sm:$0xff]  }
 0x2fb   : > { %v3169_v15 = vpop.eup %3168 }
 0x2fc   : > { %v790_v16 = vsel %vm783_vm1, %v3169_v15, 0.0 }
 0x2fd   : > { %791 = vadd.xlane.f32.xlu0 %v790_v16  ;;  %v3151_v16 = vld [vmem:[#allocation7 + $0x78] sm:$0xff]  }
 0x2fe   : > { %2881 = vmatpush3.bf16.msra.mxu0 %v3151_v16  ;;  %v2664_v16 = vcombine.high %v299_v54, %v303_v55  ;;  %v1369_v54 = vld [vmem:[#allocation5 + $0x240] sm:$0xff] }
 0x2ff   : > { %2906 = vmatprep.subr.bf16.mxu0 %v3393_v4  ;;  %v1373_v55 = vld [vmem:[#allocation5 + $0x260] sm:$0xff] }
 0x38a   : > { %v792_v21 = vpop.xlane.xlu0 %791 }
 0x38b   : > { %3170 = vrcp.f32 %v792_v21 }
 0x395   : > { %v3171_v26 = vpop.eup %3170 }
 0x396   : > { %v794_v28 = vmul.f32 %v3171_v26, %v3169_v15 }
 0x398   : > { %v795_v31 = vpack.c.bf16 %v794_v28, %v794_v28 }
 0x39a   : > { %2851 = vmatmul.mubr.msk.bf16.vlgmr.msra.gmra.mrb[8].mxu1 %vm783_vm1, %v795_v31  ;;  %v1141_v31 = vrot.slane %v3649_v8, %v1140_v30 }
 0x39b   : > { %2855 = vmatpush3.bf16.xpose.msra.mxu1 %v861_v32  ;;  %2856 = vmatprep.mubr.msk.bf16.mxu1 %vm3394_vm0, %v3393_v4 }
 0x39c   : > { %2860 = vmatprep.subr.bf16.mxu1 %v3393_v4 }
 0x3a2   : > { %2857 = vmatmul.mubr.bf16.vlgmr.msra.gmra.mrb[12].mxu1 %v860_v35 }
 0x3a3   : > { %2861 = vmatpush3.bf16.msra.mxu1 %v919_v36  ;;  %2862 = vmatprep.mubr.msk.bf16.mxu1 %vm3394_vm0, %v3393_v4 }
 0x3a4   : > { %2886 = vmatprep.subr.bf16.mxu1 %v3393_v4 }
 0x46d   : > { %v3702_v37 = vpop.f32.mrb[8].mxu1 }
 0x46e   : > { %v2852_v38 = vpop.f32.mrb[9].mxu1  ;;  %v844_v15 = vpack.c.bf16 %v3702_v37, %v3702_v37 }
 0x46f   : > { %v841_v39 = vpop.f32.mrb[10].mxu1  ;;  %v267_v38 = vld [vmem:[#allocation5 + $0x18] sm:$0xff] }
 0x470   : > { %v2853_v40 = vpop.f32.mrb[11].mxu1  ;;  %v271_v39 = vld [vmem:[#allocation5 + $0x38] sm:$0xff] }
 0x471   : > { %v275_v40 = vld [vmem:[#allocation5 + $0x58] sm:$0xff] }
 0x475   : > { %v896_v41 = vpop.f32.mrb[12].mxu1 }
 0x476   : > { %v2858_v17 = vpop.f32.mrb[13].mxu1  ;;  %v902_v42 = vsel %vm783_vm1, %v896_v41, -inf }
 0x477   : > { %903 = vmax.xlane.f32.xlu1 %v902_v42  ;;  %v899_v43 = vpop.f32.mrb[14].mxu1  ;;  %v279_v17 = vld [vmem:[#allocation5 + $0x78] sm:$0xff] }
 0x478   : > { %v2859_v44 = vpop.f32.mrb[15].mxu1  ;;  %v2653_v42 = vcombine.low %v275_v40, %v279_v17  ;;  %v260_v43 = vand.u32 127, %v259_v5  ;;  %v2655_v5 = vcombine.low %v291_v52, %v295_v53 }
 0x47a   : > { %vm261_vm3 = vcmp.lt.s32.totalorder %v260_v43, 32 }
 0x504   : > { %v904_v45 = vpop.xlane.xlu1 %903 }
 0x505   : > { %v905_v46 = vsub.f32 %v896_v41, %v904_v45  ;;  %v2652_v41 = vcombine.low %v267_v38, %v271_v39 }
 0x507   : > { %v906_v47 = vmul.f32 1.442695, %v905_v46 }
 0x509   : > { %3172 = vpow2.f32 %v906_v47 }
 0x513   : > { %v3173_v48 = vpop.eup %3172 }
 0x514   : > { %v908_v49 = vsel %vm783_vm1, %v3173_v48, 0.0 }
 0x515   : > { %909 = vadd.xlane.f32.xlu1 %v908_v49  ;;  %v283_v49 = vld [vmem:[#allocation5 + $0x98] sm:$0xff] }
 0x516   : > { %v2654_v51 = vcombine.low %v283_v49, %v287_v50 }
 0x5a2   : > { %v910_v57 = vpop.xlane.xlu1 %909 }
 0x5a3   : > { %3174 = vrcp.f32 %v910_v57  ;;  %v307_v57 = vld [vmem:[#allocation5 + $0x158] sm:$0xff] }
 0x5ad   : > { %v3175_v58 = vpop.eup %3174 }
 0x5ae   : > { %v912_v59 = vmul.f32 %v3175_v58, %v3173_v48  ;;  %v311_v58 = vld [vmem:[#allocation5 + $0x178] sm:$0xff] }
 0x5b0   : > { %v913_v62 = vpack.c.bf16 %v912_v59, %v912_v59  ;;  %v2657_v59 = vcombine.low %v307_v57, %v311_v58 }
 0x5b2   : > { %2863 = vmatmul.mubr.msk.bf16.vlgmr.msra.gmra.mrb[16].mxu1 %vm783_vm1, %v913_v62  ;;  %v319_v62 = vld [vmem:[#allocation5 + $0x1b8] sm:$0xff] }
 0x5b3   : > { %2887 = vmatpush3.bf16.msra.mxu1 %v3136_v60  ;;  %2902 = vmatprep.mubr.msk.bf16.mxu1 %vm3394_vm0, %v3393_v4  ;;  %v315_v60 = vld [vmem:[#allocation5 + $0x198] sm:$0xff] }
 0x5b4   : > { %2888 = vmatprep.subr.bf16.mxu1 %v3393_v4 }
 0x5b7   : > { %2889 = vmatpush3.bf16.msra.mxu1 %v3137_v1  ;;  %v2658_v1 = vcombine.low %v315_v60, %v319_v62 }
 0x5b8   : > { %2890 = vmatprep.subr.bf16.mxu1 %v3393_v4 }
 0x5bb   : > { %2891 = vmatpush3.bf16.msra.mxu1 %v3138_v2  ;;  %v323_v2 = vld [vmem:[#allocation5 + $0x1d8] sm:$0xff] }
 0x5bc   : > { %2892 = vmatprep.subr.bf16.mxu1 %v3393_v4 }
 0x5bf   : > { %2893 = vmatpush3.bf16.msra.mxu1 %v3139_v3  ;;  %v327_v3 = vld [vmem:[#allocation5 + $0x1f8] sm:$0xff] }
 0x5c0   : > { %2894 = vmatprep.subr.bf16.mxu1 %v3393_v4 }
 0x5c3   : > { %2895 = vmatpush3.bf16.msra.mxu1 %v3140_v10  ;;  %v2659_v10 = vcombine.low %v323_v2, %v327_v3 }
 0x5c4   : > { %2896 = vmatprep.subr.bf16.mxu1 %v3393_v4 }
 0x5c7   : > { %2897 = vmatpush3.bf16.msra.mxu1 %v3141_v11  ;;  %v2660_v11 = vcombine.high %v267_v38, %v271_v39 }
 0x5c8   : > { %2898 = vmatprep.subr.bf16.mxu1 %v3393_v4 }
 0x5cb   : > { %2899 = vmatpush3.bf16.msra.mxu1 %v3142_v12  ;;  %v2661_v12 = vcombine.high %v275_v40, %v279_v17 }
 0x5cc   : > { %2900 = vmatprep.subr.bf16.mxu1 %v3393_v4 }
 0x5cf   : > { %2901 = vmatpush3.bf16.msra.mxu1 %v3143_v13  ;;  %v2662_v13 = vcombine.high %v283_v49, %v287_v50  ;;  %v1361_v49 = vld [vmem:[#allocation5 + $0x200] sm:$0xff] }
 0x5d0   : > { %2926 = vmatprep.subr.bf16.mxu1 %v3393_v4  ;;  %v1365_v50 = vld [vmem:[#allocation5 + $0x220] sm:$0xff] }
 0x5d2   : > { %2903 = vmatmul.mubr.bf16.vlgmr.msra.gmra.mrb[20].mxu1 %v844_v15  ;;  %v2663_v15 = vcombine.high %v291_v52, %v295_v53  ;;  %v2668_v52 = vcombine.low %v1361_v49, %v1365_v50  ;;  %v2669_v53 = vcombine.high %v1361_v49, %v1365_v50 }
 0x5d3   : > { %2942 = vmatprep.mubr.msk.bf16.mxu1 %vm3394_vm0, %v3393_v4  ;;  %2927 = vmatpush3.bf16.msra.mxu1 %v2660_v11  ;;  %v2674_v11 = vcombine.low %v1369_v54, %v1373_v55 }
 0x5d4   : > { %2928 = vmatprep.subr.bf16.mxu1 %v3393_v4 }
 0x5d7   : > { %2929 = vmatpush3.bf16.msra.mxu1 %v2661_v12 }
 0x5d8   : > { %2930 = vmatprep.subr.bf16.mxu1 %v3393_v4 }
 0x5db   : > { %2931 = vmatpush3.bf16.msra.mxu1 %v2662_v13 }
 0x5dc   : > { %2932 = vmatprep.subr.bf16.mxu1 %v3393_v4 }
 0x5df   : > { %2933 = vmatpush3.bf16.msra.mxu1 %v2663_v15 }
 0x5e0   : > { %2934 = vmatprep.subr.bf16.mxu1 %v3393_v4 }
 0x5e3   : > { %2935 = vmatpush3.bf16.msra.mxu1 %v2664_v16 }
 0x5e4   : > { %2936 = vmatprep.subr.bf16.mxu1 %v3393_v4 }
 0x685   : > { %v955_v18 = vpop.f32.mrb[16].mxu1 }
 0x686   : > { %v961_v19 = vpack.c.bf16 %v955_v18, %v955_v18  ;;  %v2864_v20 = vpop.f32.mrb[17].mxu1  ;;  %v2665_v18 = vcombine.high %v307_v57, %v311_v58  ;;  %v2675_v58 = vcombine.high %v1369_v54, %v1373_v55  ;;  %v1414_v54 = vld [vmem:[#allocation5 + $0x3a8] sm:$0xff] }
 0x687   : > { %v958_v21 = vpop.f32.mrb[18].mxu1 }
 0x688   : > { %v2865_v23 = vpop.f32.mrb[19].mxu1  ;;  %2883 = vmatmul.mubr.bf16.vlgmr.msra.gmra.mrb[8].mxu0 %v961_v19  ;;  %2937 = vmatpush3.bf16.msra.mxu1 %v2665_v18 }
 0x689   : > { %2922 = vmatprep.mubr.msk.bf16.mxu0 %vm3394_vm0, %v3393_v4  ;;  %2907 = vmatpush3.bf16.msra.mxu0 %v2652_v41  ;;  %v1158_v23 = vsub.s32 7, %v3644_v6 }
 0x68a   : > { %2908 = vmatprep.subr.bf16.mxu0 %v3393_v4  ;;  %2938 = vmatprep.subr.bf16.mxu1 %v3393_v4 }
 0x68d   : > { %2909 = vmatpush3.bf16.msra.mxu0 %v2653_v42 }
 0x68e   : > { %2910 = vmatprep.subr.bf16.mxu0 %v3393_v4 }
 0x691   : > { %2911 = vmatpush3.bf16.msra.mxu0 %v2654_v51  ;;  %v1362_v51 = vld [vmem:[#allocation5 + $0x208] sm:$0xff] }
 0x692   : > { %2912 = vmatprep.subr.bf16.mxu0 %v3393_v4 }
 0x695   : > { %2913 = vmatpush3.bf16.msra.mxu0 %v2655_v5  ;;  %v1366_v5 = vld [vmem:[#allocation5 + $0x228] sm:$0xff] }
 0x696   : > { %2914 = vmatprep.subr.bf16.mxu0 %v3393_v4  ;;  %v2671_v57 = vcombine.high %v1362_v51, %v1366_v5 }
 0x699   : > { %2915 = vmatpush3.bf16.msra.mxu0 %v2656_v56  ;;  %v2670_v56 = vcombine.low %v1362_v51, %v1366_v5  ;;  %v1409_v51 = vld [vmem:[#allocation5 + $0x380] sm:$0xff]  ;;  %v1410_v5 = vld [vmem:[#allocation5 + $0x388] sm:$0xff] }
 0x69a   : > { %2916 = vmatprep.subr.bf16.mxu0 %v3393_v4 }
 0x69d   : > { %2917 = vmatpush3.bf16.msra.mxu0 %v2657_v59  ;;  %v1370_v59 = vld [vmem:[#allocation5 + $0x248] sm:$0xff] }
 0x69e   : > { %2918 = vmatprep.subr.bf16.mxu0 %v3393_v4 }
 0x6a1   : > { %2919 = vmatpush3.bf16.msra.mxu0 %v2658_v1 }
 0x6a2   : > { %2920 = vmatprep.subr.bf16.mxu0 %v3393_v4 }
 0x6a5   : > { %v1132_v26 = vpop.f32.mrb[20].mxu1  ;;  %2921 = vmatpush3.bf16.msra.mxu0 %v2659_v10  ;;  %v1382_v10 = vld [vmem:[#allocation5 + $0x2a8] sm:$0xff] }
 0x6a6   : > { %v2904_v27 = vpop.f32.mrb[21].mxu1  ;;  %1702 = vmatprep.subr.bf16.mxu0 %v2669_v53 }
 0x6a7   : > { %v1135_v28 = vpop.f32.mrb[22].mxu1  ;;  %v1159_v27 = vrot.slane %v3649_v8, %v1158_v23 }
 0x6a8   : > { %v2905_v29 = vpop.f32.mrb[23].mxu1 }
 0x75b   : > { %v1044_v32 = vpop.f32.mrb[8].mxu0 }
 0x75c   : > { %v1133_v33 = vadd.f32 %v1132_v26, %v1044_v32  ;;  %v2884_v34 = vpop.f32.mrb[9].mxu0  ;;  %v3755_v26 = vld [vmem:[#allocation8 + $0x8] sm:$0xff] }
 0x75d   : > { %v1047_v14 = vpop.f32.mrb[10].mxu0  ;;  %v1170_v8 = vrot.slane %v3755_v26, %v3685_v25  ;;  %v1264_v42 = vrot.slane %v3755_v26, %v3647_v7 }
 0x75e   : > { %v1142_v35 = vadd.f32 %v1141_v31, %v1133_v33  ;;  %v2885_v36 = vpop.f32.mrb[11].mxu0  ;;  %v1164_v31 = vrot.slane %v3755_v26, %v3652_v9  ;;  %v2666_v14 = vcombine.high %v315_v60, %v319_v62  ;;  %v1374_v60 = vld [vmem:[#allocation5 + $0x268] sm:$0xff]  ;;  %v1377_v62 = vld [vmem:[#allocation5 + $0x280] sm:$0xff] }
 0x75f   : > { %v2677_v1 = vcombine.high %v1370_v59, %v1374_v60  ;;  %v2676_v12 = vcombine.low %v1370_v59, %v1374_v60  ;;  %v1421_v59 = vld [vmem:[#allocation5 + $0x3e0] sm:$0xff]  ;;  %v1418_v60 = vld [vmem:[#allocation5 + $0x3c8] sm:$0xff] }
 0x760   : > { %v1143_v37 = vadd.f32 %v1142_v35, %v3631_v63  ;;  %v3740_v63 = vsel %vm261_vm3, 1.0, %v3393_v4  ;;  %2939 = vmatpush3.bf16.msra.mxu1 %v2666_v14  ;;  %v2667_v35 = vcombine.high %v323_v2, %v327_v3  ;;  %v1381_v2 = vld [vmem:[#allocation5 + $0x2a0] sm:$0xff]  ;;  %v1378_v3 = vld [vmem:[#allocation5 + $0x288] sm:$0xff] }
 0x761   : > { %2940 = vmatprep.subr.bf16.mxu1 %v3393_v4  ;;  %v2681_v13 = vcombine.high %v1377_v62, %v1381_v2  ;;  %v2683_v15 = vcombine.high %v1378_v3, %v1382_v10  ;;  %v2680_v16 = vcombine.low %v1377_v62, %v1381_v2  ;;  %v2682_v18 = vcombine.low %v1378_v3, %v1382_v10  ;;  %v1422_v2 = vld [vmem:[#allocation5 + $0x3e8] sm:$0xff]  ;;  %v1363_v3 = vld [vmem:[#allocation5 + $0x210] sm:$0xff] }
 0x762   : > { %1144 = vadd.xlane.f32.xlu0 %v1143_v37  ;;  %v1367_v10 = vld [vmem:[#allocation5 + $0x230] sm:$0xff] }
 0x764   : > { %2941 = vmatpush3.bf16.msra.mxu1 %v2667_v35 }
 0x765   : > { %1743 = vmatprep.subr.bf16.mxu1 %v2671_v57  ;;  %v2706_v57 = vcombine.low %v1410_v5, %v1414_v54 }
 0x7ef   : > { %v1145_v44 = vpop.xlane.xlu0 %1144 }
 0x7f0   : > { %v1146_v45 = vmul.f32 0.03125, %v1145_v44 }
 0x7f2   : > { %v1147_v46 = vsub.f32 %v1143_v37, %v1146_v45 }
 0x7f4   : > { %v1148_v47 = vmul.f32 %v3740_v63, %v1147_v46 }
 0x7f6   : > { %v1149_v48 = vmul.f32 %v1148_v47, %v1148_v47 }
 0x7f8   : > { %1150 = vadd.xlane.f32.xlu1 %v1149_v48 }
 0x885   : > { %v1151_v19 = vpop.xlane.xlu1 %1150 }
 0x886   : > { %v1152_v20 = vmul.f32 0.03125, %v1151_v19 }
 0x888   : > { %v1153_v21 = vadd.f32 1e-05, %v1152_v20 }
 0x88a   : > { %3176 = vrsqrt.f32 %v1153_v21 }
 0x894   : > { %v3177_v28 = vpop.eup %3176 }
 0x895   : > { %v1155_v29 = vmul.f32 %v3177_v28, %v1148_v47 }
 0x897   : > { %v1160_v32 = vmul.f32 %v1159_v27, %v1155_v29  ;;  %v1385_v29 = vld [vmem:[#allocation5 + $0x2c0] sm:$0xff] }
 0x899   : > { %v1165_v33 = vadd.f32 %v1164_v31, %v1160_v32  ;;  %v1389_v31 = vld [vmem:[#allocation5 + $0x2e0] sm:$0xff] }
 0x89a   : > { %v2687_v32 = vcombine.high %v1385_v29, %v1389_v31  ;;  %v2686_v14 = vcombine.low %v1385_v29, %v1389_v31  ;;  %v1358_v29 = vrot.slane %v3755_v26, %v3671_v61 }
 0x89b   : > { %v1166_v34 = vpack.c.bf16 %v1165_v33, %v1165_v33 }
 0x89d   : > { %2923 = vmatmul.mubr.bf16.vlgmr.msra.gmra.mrb[12].mxu0 %v1166_v34  ;;  %v1390_v34 = vld [vmem:[#allocation5 + $0x2e8] sm:$0xff] }
 0x89e   : > { %1734 = vmatprep.mubr.bf16.mxu0 %v3392_v0  ;;  %1703 = vmatpush1.bf16.msra.mxu0 %v2668_v52  ;;  %v1413_v52 = vld [vmem:[#allocation5 + $0x3a0] sm:$0xff] }
 0x89f   : > { %1704 = vmatprep.subr.bf16.mxu0 %v2675_v58  ;;  %v2705_v53 = vcombine.high %v1409_v51, %v1413_v52  ;;  %v2704_v55 = vcombine.low %v1409_v51, %v1413_v52  ;;  %v1417_v58 = vld [vmem:[#allocation5 + $0x3c0] sm:$0xff]  ;;  %v1419_v51 = vld [vmem:[#allocation5 + $0x3d0] sm:$0xff] }
 0x8a0   : > { %v2710_v62 = vcombine.low %v1417_v58, %v1421_v59  ;;  %v1423_v52 = vld [vmem:[#allocation5 + $0x3f0] sm:$0xff] }
 0x8a2   : > { %1705 = vmatpush1.bf16.msra.mxu0 %v2674_v11  ;;  %v2712_v11 = vcombine.low %v1418_v60, %v1422_v2 }
 0x8a3   : > { %1706 = vmatprep.subr.bf16.mxu0 %v2681_v13  ;;  %v2672_v13 = vcombine.low %v1363_v3, %v1367_v10 }
 0x8a6   : > { %1707 = vmatpush1.bf16.msra.mxu0 %v2680_v16 }
 0x8a7   : > { %1708 = vmatprep.subr.bf16.mxu0 %v2687_v32  ;;  %v1371_v32 = vld [vmem:[#allocation5 + $0x250] sm:$0xff] }
 0x8aa   : > { %1709 = vmatpush1.bf16.msra.mxu0 %v2686_v14 }
 0x970   : > { %v1253_v36 = vpop.f32.mrb[12].mxu0 }
 0x971   : > { %v1254_v37 = vadd.f32 %v1253_v36, %v1170_v8  ;;  %v2924_v38 = vpop.f32.mrb[13].mxu0  ;;  %v1393_v36 = vld [vmem:[#allocation5 + $0x300] sm:$0xff] }
 0x972   : > { %v1256_v39 = vpop.f32.mrb[14].mxu0 }
 0x973   : > { %v1259_v40 = vmax.f32 %v1254_v37, 0.0  ;;  %v2925_v41 = vpop.f32.mrb[15].mxu0  ;;  %v1397_v37 = vld [vmem:[#allocation5 + $0x320] sm:$0xff]  ;;  %v1394_v39 = vld [vmem:[#allocation5 + $0x308] sm:$0xff] }
 0x974   : > { %v2693_v38 = vcombine.high %v1393_v36, %v1397_v37  ;;  %v2692_v41 = vcombine.low %v1393_v36, %v1397_v37  ;;  %v1383_v36 = vld [vmem:[#allocation5 + $0x2b0] sm:$0xff] }
 0x975   : > { %v1260_v17 = vpack.c.bf16 %v1259_v40, %v1259_v40  ;;  %v1398_v40 = vld [vmem:[#allocation5 + $0x328] sm:$0xff] }
 0x976   : > { %1710 = vmatprep.subr.bf16.mxu0 %v2693_v38  ;;  %v1391_v38 = vld [vmem:[#allocation5 + $0x2f0] sm:$0xff] }
 0x977   : > { %2943 = vmatmul.mubr.bf16.vlgmr.msra.gmra.mrb[24].mxu1 %v1260_v17  ;;  %v2695_v17 = vcombine.high %v1394_v39, %v1398_v40  ;;  %1711 = vmatpush1.bf16.msra.mxu0 %v2692_v41  ;;  %v1395_v41 = vld [vmem:[#allocation5 + $0x310] sm:$0xff] }
 0x978   : > { %1775 = vmatprep.mubr.bf16.mxu1 %v3392_v0  ;;  %1744 = vmatpush1.bf16.msra.mxu1 %v2670_v56  ;;  %v2707_v56 = vcombine.high %v1410_v5, %v1414_v54  ;;  %v2715_v5 = vcombine.high %v1419_v51, %v1423_v52  ;;  %v2714_v54 = vcombine.low %v1419_v51, %v1423_v52 }
 0x979   : > { %1745 = vmatprep.subr.bf16.mxu1 %v2677_v1  ;;  %v2711_v1 = vcombine.high %v1417_v58, %v1421_v59 }
 0x97c   : > { %1746 = vmatpush1.bf16.msra.mxu1 %v2676_v12  ;;  %v2713_v12 = vcombine.high %v1418_v60, %v1422_v2 }
 0x97d   : > { %1747 = vmatprep.subr.bf16.mxu1 %v2683_v15  ;;  %v2673_v15 = vcombine.high %v1363_v3, %v1367_v10 }
 0x980   : > { %1748 = vmatpush1.bf16.msra.mxu1 %v2682_v18 }
 0xa4a   : > { %v1331_v43 = vpop.f32.mrb[24].mxu1 }
 0xa4b   : > { %v1332_v44 = vadd.f32 %v1331_v43, %v1264_v42  ;;  %v2944_v45 = vpop.f32.mrb[25].mxu1  ;;  %v2694_v42 = vcombine.low %v1394_v39, %v1398_v40  ;;  %v1401_v43 = vld [vmem:[#allocation5 + $0x340] sm:$0xff] }
 0xa4c   : > { %v1334_v46 = vpop.f32.mrb[26].mxu1 }
 0xa4d   : > { %v2945_v47 = vpop.f32.mrb[27].mxu1  ;;  %v1337_v48 = vadd.f32 %v1332_v44, %v1165_v33  ;;  %v1386_v33 = vld [vmem:[#allocation5 + $0x2c8] sm:$0xff]  ;;  %v1405_v44 = vld [vmem:[#allocation5 + $0x360] sm:$0xff] }
 0xa4e   : > { %v2689_v35 = vcombine.high %v1386_v33, %v1390_v34  ;;  %v2688_v8 = vcombine.low %v1386_v33, %v1390_v34  ;;  %v2699_v45 = vcombine.high %v1401_v43, %v1405_v44  ;;  %v1402_v46 = vld [vmem:[#allocation5 + $0x348] sm:$0xff]  ;;  %v1375_v33 = vld [vmem:[#allocation5 + $0x270] sm:$0xff] }
 0xa4f   : > { %1338 = vadd.xlane.f32.xlu0 %v1337_v48  ;;  %v1406_v47 = vld [vmem:[#allocation5 + $0x368] sm:$0xff]  ;;  %v2678_v37 = vcombine.low %v1371_v32, %v1375_v33 }
 0xa50   : > { %1749 = vmatprep.subr.bf16.mxu1 %v2689_v35  ;;  %v2701_v49 = vcombine.high %v1402_v46, %v1406_v47  ;;  %1712 = vmatprep.subr.bf16.mxu0 %v2699_v45  ;;  %v2700_v50 = vcombine.low %v1402_v46, %v1406_v47  ;;  %v2679_v35 = vcombine.high %v1371_v32, %v1375_v33  ;;  %v1407_v45 = vld [vmem:[#allocation5 + $0x370] sm:$0xff] }
 0xa51   : > { %1750 = vmatpush1.bf16.msra.mxu1 %v2688_v8  ;;  %v1379_v8 = vld [vmem:[#allocation5 + $0x290] sm:$0xff] }
 0xa52   : > { %1751 = vmatprep.subr.bf16.mxu1 %v2695_v17  ;;  %v2684_v39 = vcombine.low %v1379_v8, %v1383_v36  ;;  %v1399_v17 = vld [vmem:[#allocation5 + $0x330] sm:$0xff] }
 0xa53   : > { %v1411_v47 = vld [vmem:[#allocation5 + $0x390] sm:$0xff] }
 0xa55   : > { %1752 = vmatpush1.bf16.msra.mxu1 %v2694_v42 }
 0xa56   : > { %1753 = vmatprep.subr.bf16.mxu1 %v2701_v49 }
 0xa59   : > { %1754 = vmatpush1.bf16.msra.mxu1 %v2700_v50 }
 0xa5a   : > { %1755 = vmatprep.subr.bf16.mxu1 %v2707_v56 }
 0xa5d   : > { %1756 = vmatpush1.bf16.msra.mxu1 %v2706_v57 }
 0xa5e   : > { %1757 = vmatprep.subr.bf16.mxu1 %v2713_v12 }
 0xa61   : > { %1758 = vmatpush1.bf16.msra.mxu1 %v2712_v11 }
 0xa62   : > { %2946 = vmatprep.subr.bf16.mxu1 %v3393_v4 }
 0xadc   : > { %v1339_v19 = vpop.xlane.xlu0 %1338 }
 0xadd   : > { %v1340_v20 = vmul.f32 0.03125, %v1339_v19 }
 0xadf   : > { %v1341_v21 = vsub.f32 %v1337_v48, %v1340_v20  ;;  %v2698_v48 = vcombine.low %v1401_v43, %v1405_v44  ;;  %v1353_v20 = vrot.slane %v3755_v26, %v3679_v22  ;;  %v1387_v26 = vld [vmem:[#allocation5 + $0x2d0] sm:$0xff]  ;;  %v2697_v43 = vcombine.high %v1395_v41, %v1399_v17 }
 0xae0   : > { %v2691_v40 = vcombine.high %v1387_v26, %v1391_v38  ;;  %v2690_v42 = vcombine.low %v1387_v26, %v1391_v38  ;;  %v1403_v44 = vld [vmem:[#allocation5 + $0x350] sm:$0xff] }
 0xae1   : > { %v3770_v27 = vmul.f32 %v3740_v63, %v1341_v21  ;;  %1713 = vmatpush1.bf16.msra.mxu0 %v2698_v48  ;;  %v2703_v46 = vcombine.high %v1403_v44, %v1407_v45  ;;  %v1415_v48 = vld [vmem:[#allocation5 + $0x3b0] sm:$0xff]  ;;  %v2702_v49 = vcombine.low %v1403_v44, %v1407_v45 }
 0xae2   : > { %1714 = vmatprep.subr.bf16.mxu0 %v2705_v53  ;;  %v2709_v50 = vcombine.high %v1411_v47, %v1415_v48  ;;  %v2708_v53 = vcombine.low %v1411_v47, %v1415_v48 }
 0xae3   : > { %v1343_v28 = vmul.f32 %v3770_v27, %v3770_v27 }
 0xae5   : > { %1344 = vadd.xlane.f32.xlu1 %v1343_v28  ;;  %1715 = vmatpush1.bf16.msra.mxu0 %v2704_v55  ;;  %v3790_v55 = vld [vmem:[#allocation8 + $0x10] sm:$0xff] }
 0xae6   : > { %1716 = vmatprep.subr.bf16.mxu0 %v2711_v1  ;;  %v1833_v56 = vrot.slane %v3790_v55, %v3647_v7  ;;  %v1828_v1 = vrot.slane %v3790_v55, %v3652_v9  ;;  %v1945_v44 = vrot.slane %v3790_v55, %v3685_v25 }
 0xae9   : > { %1717 = vmatpush1.bf16.msra.mxu0 %v2710_v62 }
 0xaea   : > { %1784 = vmatprep.subr.bf16.mxu0 %v2673_v15 }
 0xb72   : > { %v1345_v16 = vpop.xlane.xlu1 %1344 }
 0xb73   : > { %v1346_v18 = vmul.f32 0.03125, %v1345_v16  ;;  %v1838_v16 = vrot.slane %v3790_v55, %v3671_v61 }
 0xb75   : > { %v1347_v19 = vadd.f32 1e-05, %v1346_v18 }
 0xb77   : > { %3178 = vrsqrt.f32 %v1347_v19 }
 0xb81   : > { %v3179_v21 = vpop.eup %3178 }
 0xb82   : > { %v1349_v28 = vmul.f32 %v3179_v21, %v3770_v27  ;;  %v2685_v27 = vcombine.high %v1379_v8, %v1383_v36 }
 0xb84   : > { %v1354_v31 = vmul.f32 %v1353_v20, %v1349_v28 }
 0xb86   : > { %v3780_v34 = vadd.f32 %v1358_v29, %v1354_v31 }
 0xb88   : > { %v1461_v14 = vpack.c.bf16 %v3780_v34, %v3780_v34 }
 0xb8a   : > { %1735 = vmatmul.mubr.bf16.vlgmr.msra.gmra.mrb[16].mxu0 %v1461_v14  ;;  %1776 = vmatmul.mubr.bf16.vlgmr.msra.gmra.mrb[28].mxu1 %v1461_v14 }
 0xb8b   : > { %1785 = vmatpush1.bf16.msra.mxu0 %v2672_v13  ;;  %1816 = vmatprep.mubr.bf16.mxu0 %v3392_v0  ;;  %v2696_v0 = vcombine.low %v1395_v41, %v1399_v17 }
 0xb8c   : > { %1786 = vmatprep.subr.bf16.mxu0 %v2679_v35  ;;  %2948 = vmatprep.mubr.msk.bf16.mxu1 %vm3394_vm0, %v3393_v4 }
 0xb8f   : > { %1787 = vmatpush1.bf16.msra.mxu0 %v2678_v37 }
 0xb90   : > { %1788 = vmatprep.subr.bf16.mxu0 %v2685_v27 }
 0xb93   : > { %1789 = vmatpush1.bf16.msra.mxu0 %v2684_v39 }
 0xb94   : > { %1790 = vmatprep.subr.bf16.mxu0 %v2691_v40  ;;  %v1950_v40 = vrot.slane %v3790_v55, %v3679_v22 }
 0xb97   : > { %1791 = vmatpush1.bf16.msra.mxu0 %v2690_v42  ;;  %v1955_v42 = vrot.slane %v3790_v55, %v857_v24 }
 0xb98   : > { %1792 = vmatprep.subr.bf16.mxu0 %v2697_v43 }
 0xb9b   : > { %1793 = vmatpush1.bf16.msra.mxu0 %v2696_v0 }
 0xb9c   : > { %1794 = vmatprep.subr.bf16.mxu0 %v2703_v46 }
 0xb9f   : > { %1795 = vmatpush1.bf16.msra.mxu0 %v2702_v49 }
 0xba0   : > { %1796 = vmatprep.subr.bf16.mxu0 %v2709_v50 }
 0xba3   : > { %1797 = vmatpush1.bf16.msra.mxu0 %v2708_v53 }
 0xba4   : > { %1798 = vmatprep.subr.bf16.mxu0 %v2715_v5 }
 0xba7   : > { %1799 = vmatpush1.bf16.msra.mxu0 %v2714_v54 }
 0xba8   : > { %2970 = vmatprep.subr.bf16.mxu0 %v3393_v4 }
 0xbaa   : > { %1817 = vmatmul.mubr.bf16.vlgmr.msra.gmra.mrb[20].mxu0 %v1461_v14 }
 0xbab   : > { %2986 = vmatprep.mubr.msk.bf16.mxu0 %vm3394_vm0, %v3393_v4 }
 0xc5d   : > { %v1736_v57 = vpop.f32.mrb[16].mxu0  ;;  %v1777_v58 = vpop.f32.mrb[28].mxu1 }
 0xc5e   : > { %v1834_v59 = vadd.f32 %v1833_v56, %v1777_v58  ;;  %v1738_v60 = vpop.f32.mrb[17].mxu0  ;;  %v1779_v62 = vpop.f32.mrb[29].mxu1  ;;  %v1829_v13 = vadd.f32 %v1828_v1, %v1736_v57 }
 0xc5f   : > { %v1740_v2 = vpop.f32.mrb[18].mxu0  ;;  %v1781_v3 = vpop.f32.mrb[30].mxu1  ;;  %v1951_v17 = vadd.f32 %v1950_v40, %v1779_v62  ;;  %v1946_v47 = vadd.f32 %v1945_v44, %v1738_v60  ;;  %v2238_v44 = vrot.slane %v3790_v55, %v1140_v30 }
 0xc60   : > { %v1841_v10 = vpack.c.bf16 %v1834_v59, %v1834_v59  ;;  %v1741_v11 = vpop.f32.mrb[19].mxu0  ;;  %v1782_v12 = vpop.f32.mrb[31].mxu1  ;;  %v1840_v15 = vpack.c.bf16 %v1829_v13, %v1829_v13  ;;  %v3160_v3 = vld [vmem:[#allocation7 + $0xc0] sm:$0xff]  }
 0xc61   : > { %v1958_v0 = vpack.c.bf16 %v1951_v17, %v1951_v17  ;;  %v1957_v49 = vpack.c.bf16 %v1946_v47, %v1946_v47  ;;  %2971 = vmatpush3.bf16.msra.mxu0 %v3160_v3  ;;  %v3162_v11 = vld [vmem:[#allocation7 + $0xd0] sm:$0xff]   ;;  %v3163_v12 = vld [vmem:[#allocation7 + $0xd8] sm:$0xff]   ;;  %v3164_v13 = vld [vmem:[#allocation7 + $0xe0] sm:$0xff]  }
 0xc62   : > { %2947 = vmatpush3.bf16.xpose.msra.mxu1 %v1841_v10  ;;  %v3161_v10 = vld [vmem:[#allocation7 + $0xc8] sm:$0xff]   ;;  %2972 = vmatprep.subr.bf16.mxu0 %v3393_v4 }
 0xc63   : > { %2952 = vmatprep.subr.bf16.mxu1 %v3393_v4 }
 0xc65   : > { %2973 = vmatpush3.bf16.msra.mxu0 %v3161_v10  ;;  %v1396_v10 = vld [vmem:[#allocation5 + $0x318] sm:$0xff] }
 0xc66   : > { %2974 = vmatprep.subr.bf16.mxu0 %v3393_v4 }
 0xc69   : > { %2949 = vmatmul.mubr.bf16.vlgmr.msra.gmra.mrb[32].mxu1 %v1840_v15  ;;  %2975 = vmatpush3.bf16.msra.mxu0 %v3162_v11  ;;  %v3165_v15 = vld [vmem:[#allocation7 + $0xe8] sm:$0xff]   ;;  %v1400_v11 = vld [vmem:[#allocation5 + $0x338] sm:$0xff] }
 0xc6a   : > { %2954 = vmatprep.mubr.msk.bf16.mxu1 %vm3394_vm0, %v3393_v4  ;;  %2976 = vmatprep.subr.bf16.mxu0 %v3393_v4 }
 0xc6d   : > { %2977 = vmatpush3.bf16.msra.mxu0 %v3163_v12  ;;  %v2738_v12 = vcombine.low %v1396_v10, %v1400_v11 }
 0xc6e   : > { %2978 = vmatprep.subr.bf16.mxu0 %v3393_v4 }
 0xc71   : > { %2979 = vmatpush3.bf16.msra.mxu0 %v3164_v13  ;;  %v1404_v13 = vld [vmem:[#allocation5 + $0x358] sm:$0xff] }
 0xc72   : > { %2980 = vmatprep.subr.bf16.mxu0 %v3393_v4 }
 0xc75   : > { %2981 = vmatpush3.bf16.msra.mxu0 %v3165_v15  ;;  %v1408_v15 = vld [vmem:[#allocation5 + $0x378] sm:$0xff] }
 0xc76   : > { %2982 = vmatprep.subr.bf16.mxu0 %v3393_v4 }
 0xc7d   : > { %v1818_v18 = vpop.f32.mrb[20].mxu0 }
 0xc7e   : > { %v1839_v19 = vadd.f32 %v1838_v16, %v1818_v18  ;;  %v1820_v20 = vpop.f32.mrb[21].mxu0  ;;  %v3166_v16 = vld [vmem:[#allocation7 + $0xf0] sm:$0xff]  }
 0xc7f   : > { %v1822_v21 = vpop.f32.mrb[22].mxu0  ;;  %v1956_v46 = vadd.f32 %v1955_v42, %v1820_v20  ;;  %2983 = vmatpush3.bf16.msra.mxu0 %v3166_v16  ;;  %v2739_v16 = vcombine.low %v1404_v13, %v1408_v15 }
 0xc80   : > { %v1894_v28 = vpack.c.bf16 %v1839_v19, %v1839_v19  ;;  %v1823_v29 = vpop.f32.mrb[23].mxu0  ;;  %2984 = vmatprep.subr.bf16.mxu0 %v3393_v4  ;;  %v3152_v21 = vld [vmem:[#allocation7 + $0x80] sm:$0xff]  }
 0xc81   : > { %v2011_v48 = vpack.c.bf16 %v1956_v46, %v1956_v46  ;;  %v3153_v29 = vld [vmem:[#allocation7 + $0x88] sm:$0xff]  }
 0xc82   : > { %v1899_v31 = vsel %vm800_vm2, %v1894_v28, 0 }
 0xc83   : > { %2953 = vmatpush3.bf16.msra.mxu1 %v1899_v31  ;;  %v2016_v24 = vsel %vm800_vm2, %v2011_v48, 0  ;;  %v3154_v31 = vld [vmem:[#allocation7 + $0x90] sm:$0xff]  }
 0xc84   : > { %2958 = vmatprep.subr.bf16.mxu1 %v3393_v4 }
 0xd3c   : > { %v1876_v32 = vpop.f32.mrb[32].mxu1 }
 0xd3d   : > { %v2950_v33 = vpop.f32.mrb[33].mxu1  ;;  %v1882_v14 = vsel %vm783_vm1, %v1876_v32, -inf }
 0xd3e   : > { %1883 = vmax.xlane.f32.xlu0 %v1882_v14  ;;  %v1879_v35 = vpop.f32.mrb[34].mxu1  ;;  %v3156_v33 = vld [vmem:[#allocation7 + $0xa0] sm:$0xff]   ;;  %v3157_v14 = vld [vmem:[#allocation7 + $0xa8] sm:$0xff]  }
 0xd3f   : > { %v2951_v8 = vpop.f32.mrb[35].mxu1  ;;  %v3158_v35 = vld [vmem:[#allocation7 + $0xb0] sm:$0xff]  }
 0xd40   : > { %v3159_v8 = vld [vmem:[#allocation7 + $0xb8] sm:$0xff]  }
 0xdcb   : > { %v1884_v36 = vpop.xlane.xlu0 %1883 }
 0xdcc   : > { %v1885_v37 = vsub.f32 %v1876_v32, %v1884_v36  ;;  %v3155_v32 = vld [vmem:[#allocation7 + $0x98] sm:$0xff]  }
 0xdce   : > { %v1886_v27 = vmul.f32 1.442695, %v1885_v37  ;;  %v3167_v37 = vld [vmem:[#allocation7 + $0xf8] sm:$0xff]  }
 0xdcf   : > { %2985 = vmatpush3.bf16.msra.mxu0 %v3167_v37 }
 0xdd0   : > { %3180 = vpow2.f32 %v1886_v27  ;;  %3010 = vmatprep.subr.bf16.mxu0 %v3393_v4 }
 0xdda   : > { %v3181_v26 = vpop.eup %3180 }
 0xddb   : > { %v1888_v38 = vsel %vm783_vm1, %v3181_v26, 0.0 }
 0xddc   : > { %1889 = vadd.xlane.f32.xlu1 %v1888_v38 }
 0xe69   : > { %v1890_v39 = vpop.xlane.xlu1 %1889 }
 0xe6a   : > { %3182 = vrcp.f32 %v1890_v39 }
 0xe74   : > { %v3183_v41 = vpop.eup %3182 }
 0xe75   : > { %v1892_v43 = vmul.f32 %v3183_v41, %v3181_v26 }
 0xe77   : > { %v1893_v45 = vpack.c.bf16 %v1892_v43, %v1892_v43 }
 0xe79   : > { %2955 = vmatmul.mubr.msk.bf16.vlgmr.msra.gmra.mrb[36].mxu1 %vm783_vm1, %v1893_v45 }
 0xe7a   : > { %2959 = vmatpush3.bf16.xpose.msra.mxu1 %v1958_v0  ;;  %2960 = vmatprep.mubr.msk.bf16.mxu1 %vm3394_vm0, %v3393_v4 }
 0xe7b   : > { %2964 = vmatprep.subr.bf16.mxu1 %v3393_v4 }
 0xe81   : > { %2961 = vmatmul.mubr.bf16.vlgmr.msra.gmra.mrb[40].mxu1 %v1957_v49 }
 0xe82   : > { %2965 = vmatpush3.bf16.msra.mxu1 %v2016_v24  ;;  %2966 = vmatprep.mubr.msk.bf16.mxu1 %vm3394_vm0, %v3393_v4 }
 0xe83   : > { %2990 = vmatprep.subr.bf16.mxu1 %v3393_v4 }
 0xf4c   : > { %v3820_v50 = vpop.f32.mrb[36].mxu1 }
 0xf4d   : > { %v2956_v51 = vpop.f32.mrb[37].mxu1  ;;  %v1941_v36 = vpack.c.bf16 %v3820_v50, %v3820_v50  ;;  %v1364_v50 = vld [vmem:[#allocation5 + $0x218] sm:$0xff] }
 0xf4e   : > { %v1938_v52 = vpop.f32.mrb[38].mxu1  ;;  %v1368_v51 = vld [vmem:[#allocation5 + $0x238] sm:$0xff] }
 0xf4f   : > { %v2957_v53 = vpop.f32.mrb[39].mxu1  ;;  %v1372_v52 = vld [vmem:[#allocation5 + $0x258] sm:$0xff] }
 0xf50   : > { %v2734_v53 = vcombine.low %v1364_v50, %v1368_v51 }
 0xf54   : > { %v1993_v5 = vpop.f32.mrb[40].mxu1 }
 0xf55   : > { %v2962_v54 = vpop.f32.mrb[41].mxu1  ;;  %v1999_v56 = vsel %vm783_vm1, %v1993_v5, -inf }
 0xf56   : > { %2000 = vmax.xlane.f32.xlu0 %v1999_v56  ;;  %v1996_v57 = vpop.f32.mrb[42].mxu1 }
 0xf57   : > { %v2963_v58 = vpop.f32.mrb[43].mxu1 }
 0xfe3   : > { %v2001_v59 = vpop.xlane.xlu0 %2000 }
 0xfe4   : > { %v2002_v60 = vsub.f32 %v1993_v5, %v2001_v59  ;;  %v1376_v5 = vld [vmem:[#allocation5 + $0x278] sm:$0xff] }
 0xfe5   : > { %v2735_v54 = vcombine.low %v1372_v52, %v1376_v5 }
 0xfe6   : > { %v2003_v62 = vmul.f32 1.442695, %v2002_v60  ;;  %v1384_v60 = vld [vmem:[#allocation5 + $0x2b8] sm:$0xff] }
 0xfe8   : > { %3184 = vpow2.f32 %v2003_v62 }
 0xff2   : > { %v3185_v1 = vpop.eup %3184 }
 0xff3   : > { %v2005_v2 = vsel %vm783_vm1, %v3185_v1, 0.0 }
 0xff4   : > { %2006 = vadd.xlane.f32.xlu1 %v2005_v2  ;;  %v1392_v2 = vld [vmem:[#allocation5 + $0x2f8] sm:$0xff] }
0x1081   : > { %v2007_v18 = vpop.xlane.xlu1 %2006 }
0x1082   : > { %3186 = vrcp.f32 %v2007_v18  ;;  %v1412_v18 = vld [vmem:[#allocation5 + $0x398] sm:$0xff] }
0x108c   : > { %v3187_v19 = vpop.eup %3186 }
0x108d   : > { %v2009_v20 = vmul.f32 %v3187_v19, %v3185_v1  ;;  %v1388_v1 = vld [vmem:[#allocation5 + $0x2d8] sm:$0xff] }
0x108e   : > { %v2737_v3 = vcombine.low %v1388_v1, %v1392_v2  ;;  %v1416_v19 = vld [vmem:[#allocation5 + $0x3b8] sm:$0xff] }
0x108f   : > { %v2010_v28 = vpack.c.bf16 %v2009_v20, %v2009_v20  ;;  %v2740_v20 = vcombine.low %v1412_v18, %v1416_v19 }
0x1091   : > { %2967 = vmatmul.mubr.msk.bf16.vlgmr.msra.gmra.mrb[44].mxu1 %vm783_vm1, %v2010_v28  ;;  %v1424_v28 = vld [vmem:[#allocation5 + $0x3f8] sm:$0xff] }
0x1092   : > { %2991 = vmatpush3.bf16.msra.mxu1 %v3152_v21  ;;  %3006 = vmatprep.mubr.msk.bf16.mxu1 %vm3394_vm0, %v3393_v4  ;;  %v1420_v21 = vld [vmem:[#allocation5 + $0x3d8] sm:$0xff] }
0x1093   : > { %2992 = vmatprep.subr.bf16.mxu1 %v3393_v4 }
0x1096   : > { %2993 = vmatpush3.bf16.msra.mxu1 %v3153_v29  ;;  %v2741_v29 = vcombine.low %v1420_v21, %v1424_v28 }
0x1097   : > { %2994 = vmatprep.subr.bf16.mxu1 %v3393_v4 }
0x109a   : > { %2995 = vmatpush3.bf16.msra.mxu1 %v3154_v31  ;;  %v2742_v31 = vcombine.high %v1364_v50, %v1368_v51 }
0x109b   : > { %2996 = vmatprep.subr.bf16.mxu1 %v3393_v4 }
0x109e   : > { %2997 = vmatpush3.bf16.msra.mxu1 %v3155_v32  ;;  %v2743_v32 = vcombine.high %v1372_v52, %v1376_v5 }
0x109f   : > { %2998 = vmatprep.subr.bf16.mxu1 %v3393_v4 }
0x10a2   : > { %2999 = vmatpush3.bf16.msra.mxu1 %v3156_v33 }
0x10a3   : > { %3000 = vmatprep.subr.bf16.mxu1 %v3393_v4 }
0x10a6   : > { %3001 = vmatpush3.bf16.msra.mxu1 %v3157_v14  ;;  %v2745_v14 = vcombine.high %v1388_v1, %v1392_v2 }
0x10a7   : > { %3002 = vmatprep.subr.bf16.mxu1 %v3393_v4 }
0x10aa   : > { %3003 = vmatpush3.bf16.msra.mxu1 %v3158_v35  ;;  %v2746_v35 = vcombine.high %v1396_v10, %v1400_v11 }
0x10ab   : > { %3004 = vmatprep.subr.bf16.mxu1 %v3393_v4 }
0x10ae   : > { %3005 = vmatpush3.bf16.msra.mxu1 %v3159_v8  ;;  %v2747_v8 = vcombine.high %v1404_v13, %v1408_v15 }
0x10af   : > { %3030 = vmatprep.subr.bf16.mxu1 %v3393_v4 }
0x10b1   : > { %3007 = vmatmul.mubr.bf16.vlgmr.msra.gmra.mrb[48].mxu1 %v1941_v36 }
0x10b2   : > { %3046 = vmatprep.mubr.msk.bf16.mxu1 %vm3394_vm0, %v3393_v4  ;;  %3031 = vmatpush3.bf16.msra.mxu1 %v2742_v31 }
0x10b3   : > { %3032 = vmatprep.subr.bf16.mxu1 %v3393_v4 }
0x10b6   : > { %3033 = vmatpush3.bf16.msra.mxu1 %v2743_v32 }
0x10b7   : > { %3034 = vmatprep.subr.bf16.mxu1 %v3393_v4 }
0x1164   : > { %v2052_v27 = vpop.f32.mrb[44].mxu1 }
0x1165   : > { %v2058_v26 = vpack.c.bf16 %v2052_v27, %v2052_v27  ;;  %v2968_v38 = vpop.f32.mrb[45].mxu1 }
0x1166   : > { %v2055_v39 = vpop.f32.mrb[46].mxu1  ;;  %v2256_v38 = vrot.slane %v3790_v55, %v1158_v23 }
0x1167   : > { %v2969_v40 = vpop.f32.mrb[47].mxu1  ;;  %2987 = vmatmul.mubr.bf16.vlgmr.msra.gmra.mrb[24].mxu0 %v2058_v26  ;;  %v1460_v26 = vld [vmem:[#allocation8 + $0x18] sm:$0xff] }
0x1168   : > { %3026 = vmatprep.mubr.msk.bf16.mxu0 %vm3394_vm0, %v3393_v4  ;;  %3011 = vmatpush3.bf16.msra.mxu0 %v2734_v53 }
0x1169   : > { %3012 = vmatprep.subr.bf16.mxu0 %v3393_v4 }
0x116c   : > { %3013 = vmatpush3.bf16.msra.mxu0 %v2735_v54 }
0x116d   : > { %3014 = vmatprep.subr.bf16.mxu0 %v3393_v4 }
0x1184   : > { %v2229_v41 = vpop.f32.mrb[48].mxu1 }
0x1185   : > { %v3008_v17 = vpop.f32.mrb[49].mxu1 }
0x1186   : > { %v2232_v42 = vpop.f32.mrb[50].mxu1 }
0x1187   : > { %v3009_v43 = vpop.f32.mrb[51].mxu1 }
0x123a   : > { %v2141_v45 = vpop.f32.mrb[24].mxu0 }
0x123b   : > { %v2230_v0 = vadd.f32 %v2229_v41, %v2141_v45  ;;  %v2988_v46 = vpop.f32.mrb[25].mxu0  ;;  %v2261_v41 = vrot.slane %v1460_v26, %v3652_v9  ;;  %v2749_v45 = vcombine.high %v1420_v21, %v1424_v28  ;;  %v2361_v9 = vrot.slane %v1460_v26, %v3647_v7 }
0x123c   : > { %v2144_v47 = vpop.f32.mrb[26].mxu0 }
0x123d   : > { %v2239_v48 = vadd.f32 %v2238_v44, %v2230_v0  ;;  %v2989_v49 = vpop.f32.mrb[27].mxu0  ;;  %v2748_v44 = vcombine.high %v1412_v18, %v1416_v19  ;;  %v2267_v0 = vrot.slane %v1460_v26, %v3685_v25 }
0x123f   : > { %v2240_v24 = vadd.f32 %v2239_v48, %v3780_v34  ;;  %v1380_v34 = vld [vmem:[#allocation5 + $0x298] sm:$0xff] }
0x1240   : > { %v2736_v62 = vcombine.low %v1380_v34, %v1384_v60  ;;  %v2744_v33 = vcombine.high %v1380_v34, %v1384_v60 }
0x1241   : > { %2241 = vadd.xlane.f32.xlu0 %v2240_v24 }
0x1242   : > { %3015 = vmatpush3.bf16.msra.mxu0 %v2736_v62  ;;  %3035 = vmatpush3.bf16.msra.mxu1 %v2744_v33  ;;  %v2455_v62 = vrot.slane %v1460_v26, %v3671_v61 }
0x1243   : > { %3016 = vmatprep.subr.bf16.mxu0 %v3393_v4  ;;  %3036 = vmatprep.subr.bf16.mxu1 %v3393_v4 }
0x1246   : > { %3017 = vmatpush3.bf16.msra.mxu0 %v2737_v3  ;;  %3037 = vmatpush3.bf16.msra.mxu1 %v2745_v14 }
0x1247   : > { %3018 = vmatprep.subr.bf16.mxu0 %v3393_v4  ;;  %3038 = vmatprep.subr.bf16.mxu1 %v3393_v4 }
0x124a   : > { %3019 = vmatpush3.bf16.msra.mxu0 %v2738_v12  ;;  %3039 = vmatpush3.bf16.msra.mxu1 %v2746_v35 }
0x124b   : > { %3020 = vmatprep.subr.bf16.mxu0 %v3393_v4  ;;  %3040 = vmatprep.subr.bf16.mxu1 %v3393_v4 }
0x124e   : > { %3021 = vmatpush3.bf16.msra.mxu0 %v2739_v16  ;;  %3041 = vmatpush3.bf16.msra.mxu1 %v2747_v8 }
0x124f   : > { %3022 = vmatprep.subr.bf16.mxu0 %v3393_v4  ;;  %3042 = vmatprep.subr.bf16.mxu1 %v3393_v4 }
0x1252   : > { %3023 = vmatpush3.bf16.msra.mxu0 %v2740_v20  ;;  %3043 = vmatpush3.bf16.msra.mxu1 %v2748_v44 }
0x1253   : > { %3024 = vmatprep.subr.bf16.mxu0 %v3393_v4  ;;  %3044 = vmatprep.subr.bf16.mxu1 %v3393_v4 }
0x1256   : > { %3025 = vmatpush3.bf16.msra.mxu0 %v2741_v29  ;;  %3045 = vmatpush3.bf16.msra.mxu1 %v2749_v45 }
0x12ce   : > { %v2242_v30 = vpop.xlane.xlu0 %2241 }
0x12cf   : > { %v2243_v56 = vmul.f32 0.03125, %v2242_v30 }
0x12d1   : > { %v2244_v57 = vsub.f32 %v2240_v24, %v2243_v56 }
0x12d3   : > { %v2245_v58 = vmul.f32 %v3740_v63, %v2244_v57 }
0x12d5   : > { %v2246_v59 = vmul.f32 %v2245_v58, %v2245_v58 }
0x12d7   : > { %2247 = vadd.xlane.f32.xlu1 %v2246_v59  ;;  %v2450_v59 = vrot.slane %v1460_v26, %v3679_v22 }
0x1364   : > { %v2248_v36 = vpop.xlane.xlu1 %2247 }
0x1365   : > { %v2249_v37 = vmul.f32 0.03125, %v2248_v36 }
0x1367   : > { %v2250_v27 = vadd.f32 1e-05, %v2249_v37 }
0x1369   : > { %3188 = vrsqrt.f32 %v2250_v27 }
0x1373   : > { %v3189_v39 = vpop.eup %3188 }
0x1374   : > { %v2252_v40 = vmul.f32 %v3189_v39, %v2245_v58 }
0x1376   : > { %v2257_v17 = vmul.f32 %v2256_v38, %v2252_v40 }
0x1378   : > { %v2262_v42 = vadd.f32 %v2261_v41, %v2257_v17 }
0x137a   : > { %v2263_v43 = vpack.c.bf16 %v2262_v42, %v2262_v42 }
0x137c   : > { %3027 = vmatmul.mubr.bf16.vlgmr.msra.gmra.mrb[28].mxu0 %v2263_v43 }
0x144f   : > { %v2350_v46 = vpop.f32.mrb[28].mxu0 }
0x1450   : > { %v2351_v6 = vadd.f32 %v2350_v46, %v2267_v0  ;;  %v3028_v47 = vpop.f32.mrb[29].mxu0 }
0x1451   : > { %v2353_v23 = vpop.f32.mrb[30].mxu0 }
0x1452   : > { %v2356_v55 = vmax.f32 %v2351_v6, 0.0  ;;  %v3029_v48 = vpop.f32.mrb[31].mxu0 }
0x1454   : > { %v2357_v49 = vpack.c.bf16 %v2356_v55, %v2356_v55 }
0x1456   : > { %3047 = vmatmul.mubr.bf16.vlgmr.msra.gmra.mrb[52].mxu1 %v2357_v49 }
0x1529   : > { %v2428_v24 = vpop.f32.mrb[52].mxu1 }
0x152a   : > { %v2429_v50 = vadd.f32 %v2428_v24, %v2361_v9  ;;  %v3048_v51 = vpop.f32.mrb[53].mxu1 }
0x152b   : > { %v2431_v52 = vpop.f32.mrb[54].mxu1 }
0x152c   : > { %v3049_v53 = vpop.f32.mrb[55].mxu1  ;;  %v2434_v4 = vadd.f32 %v2429_v50, %v2262_v42 }
0x152e   : > { %2435 = vadd.xlane.f32.xlu0 %v2434_v4 }
0x15bb   : > { %v2436_v25 = vpop.xlane.xlu0 %2435 }
0x15bc   : > { %v2437_v5 = vmul.f32 0.03125, %v2436_v25 }
0x15be   : > { %v2438_v54 = vsub.f32 %v2434_v4, %v2437_v5 }
0x15c0   : > { %v2439_v30 = vmul.f32 %v3740_v63, %v2438_v54 }
0x15c2   : > { %v2440_v56 = vmul.f32 %v2439_v30, %v2439_v30 }
0x15c4   : > { %2441 = vadd.xlane.f32.xlu1 %v2440_v56 }
0x1651   : > { %v2442_v57 = vpop.xlane.xlu1 %2441 }
0x1652   : > { %v2443_v58 = vmul.f32 0.03125, %v2442_v57 }
0x1654   : > { %v2444_v7 = vadd.f32 1e-05, %v2443_v58 }
0x1656   : > { %3190 = vrsqrt.f32 %v2444_v7 }
0x1660   : > { %v3191_v34 = vpop.eup %3190 }
0x1661   : > { %v2446_v60 = vmul.f32 %v3191_v34, %v2439_v30 }
0x1663   : > { %v2451_v1 = vmul.f32 %v2450_v59, %v2446_v60 }
0x1665   : > { %v2456_v63 = vadd.f32 %v2455_v62, %v2451_v1 }
0x1667   : > { %2457 = vst [vmem:[%s256_s23] sm:$0xff] %v2456_v63 }
0x1668   : > { %3319 = shalt.err (!%p3316_p4)
}
0x1669   : > { %s3320_s14 = scalar_lea.hbm %s3883_s7, 128  ;;  %s3324_s5 = scalar_lea.hbm %s3931_s4, 256 }
0x166a   : > { %p3321_p0 = scmp.ne.s32.totalorder %s3883_s7, %s3320_s14  ;;  %p3325_p8 = scmp.lt.u32.totalorder %s3883_s7, %s3931_s4 }
0x166b   : > { %p3326_p13 = scmp.lt.u32.totalorder %s3324_s5, %s3320_s14  ;;  %p3328_p10 = scmp.lt.u32.totalorder %s3320_s14, %s3883_s7 }
0x166c   : > { %p3322_p9 = pnand %p3321_p0, %p3563_p5 }
0x166d   : > { %p3327_p6 = por %p3326_p13, %p3325_p8 }
0x166e   : > { %p3323_p11 = pneg %p3322_p9 }
0x166f   : > { %p3329_p3 = por %p3328_p10, %p3327_p6 }
0x1671   : > { %p3330_p7 = pnand %p3329_p3, %p3323_p11 }
0x1673   : > { %3333 = shalt.err (!%p3330_p7)
}
0x1674   : > { %3064 = dma.vmem_to_hbm [thread:$0]  (%p3563_p5), %s3885_s30, 128, %s3883_s7, %s2459_s11  }
0x1675 PF: > { %s2484_s9 = sand.u32 1, %s3368_s15   ;;  %p3949_p12 = scmp.ne.s32.totalorder %s3936_s22, 0 }
0x1676   : > { %p3950_p2 = scmp.ge.s32.totalorder %s3380_s18, 2  ;;  %s2485_s21 = scalar_lea.sflag [#allocation4], %s2484_s9 }
0x1678   : > { %p3081_p1 = pnand %p3950_p2, %p3949_p12 }
0x167a   : > { %3363 = dma.done.wait (!%p3081_p1), %s2485_s21, 128  }
0x167b   : > { %3365 = vsyncadd (!%p3081_p1), %s2485_s21, 4294967168  ;;  %p19_p4 = scmp.ge.s32.totalorder %s3549_s10, 4   ;;  %s3951_s15 = smov %s3372_s16 }
0x167c   : > { %s3952_s16 = smov %s3376_s17  ;;  %s3953_s17 = smov %s3559_s13 }
0x167d   : > { %s3954_s18 = smov %s3549_s10  ;;  %21 = sbr.rel (!%p19_p4) target bundleno = 7 (0x7), region = 96 }
0x1684   :  { %2490 = vsyncpa [#allocation3], 1 }
0x1685   :  { %2492 = vsyncpa [#allocation3 + $0x1], 1 }
0x1686   :  { %2493 = vsyncpa [#allocation6], 1 }
0x1687   :  { %2494 = vsyncpa [#allocation9], 1 }
0x1688   :  { %2495 = vsyncpa [#allocation4], 1 }
0x1689   :  { %2497 = vsyncpa [#allocation4 + $0x1], 1 }

</bundles_post_ra>
